<compile_context>
chip_gen: v7x
topology: tpu7x:2x2x1
jax: 0.10.0
libtpu: 0.0.40
codegen_flags: <defaults>
</compile_context>

<pallas_src>
import functools

import numpy as np

import jax
import jax.numpy as jnp
from jax import lax
from jax.experimental import pallas as pl
from jax.experimental.pallas import tpu as pltpu


# ----------------------------------------------------------------------------
# Fixed architecture geometry (spatial sizes dictated by fc(45) / fc2(256))
# ----------------------------------------------------------------------------
L_IN = 16
LP1, LOUT1 = 20, 18            # conv1d_1: pad 2, k 3
LPOOL1 = 9
LP2, LOUT2 = 13, 11            # conv1d_2: pad 2, k 3
LPOOL2 = 5
C1, C2 = 3, 9                  # 1-D tower channels

HW_IN = 6
HP1, HO1 = 10, 8               # conv2d_1: pad 2, k 3
HPOOL1 = 4
HP2, HO2 = 6, 4                # conv2d_2: pad 1, k 3
HPOOL2 = 2
CIN2D, C2D1, C2D2 = 18, 32, 64  # 2-D tower channels
DIM = 30
WLANES = 256                   # lane width of the packed weight slab

# Row layout of the packed weight slab (each section padded to 8 rows).
_SECTIONS = [("T1", 24), ("T2", 40), ("WFC", 48), ("BFC", 8),
             ("M1", 768), ("M2", 768), ("W2A", 128), ("W2B", 128), ("BFC2", 8),
             ("WFC3", 128), ("BFC3", 8), ("WFC4", 64), ("BFC4", 8)]
W_OFF = {}
_off = 0
for _name, _rows in _SECTIONS:
    W_OFF[_name] = _off
    _off += _rows
W_ROWS = _off                  # 2128 rows * 256 lanes * 4 B ~= 2.1 MiB


# ----------------------------------------------------------------------------
# Host-side weight preparation (run once): BN folding, parity-ordered banded
# conv matrices with folded biases, flatten-order permuted FC weights, and
# packing of everything into a single lane-padded slab.
# ----------------------------------------------------------------------------
def _fold_bn(w, b, bn, eps=1e-5):
    w = np.asarray(w, np.float32)
    b = np.asarray(b, np.float32)
    s = np.asarray(bn["gamma"], np.float32) / np.sqrt(
        np.asarray(bn["var"], np.float32) + eps)
    t = np.asarray(bn["beta"], np.float32) - np.asarray(bn["mean"], np.float32) * s
    return w * s.reshape((-1,) + (1,) * (w.ndim - 1)), b * s + t


def prepare_params(p):
    w1, b1 = _fold_bn(p["conv1d_1_w"], p["conv1d_1_b"], p["bn1d_1"])
    w2, b2 = _fold_bn(p["conv1d_2_w"], p["conv1d_2_b"], p["bn1d_2"])
    wa, ba = _fold_bn(p["conv2d_1_w"], p["conv2d_1_b"], p["bn2d_1"])
    wb, bb = _fold_bn(p["conv2d_2_w"], p["conv2d_2_b"], p["bn2d_2"])

    # conv1d_1 band: rows = padded position lp (Cin=1) + bias row at LP1.
    # Output cols parity-ordered: col = (l%2)*27 + (l//2)*3 + co  ->  the
    # maxpool(2) is max(first 27 cols, next 27 cols).
    T1 = np.zeros((LP1 + 1, LOUT1 * C1), np.float32)
    for l in range(LOUT1):
        c0 = (l % 2) * (LPOOL1 * C1) + (l // 2) * C1
        for k in range(3):
            T1[l + k, c0:c0 + C1] = w1[:, 0, k]
        T1[LP1, c0:c0 + C1] = b1

    # conv1d_2 band: rows = (lp, ci) lp-major + bias row at 39.  Cols: l<10
    # parity-ordered ((l%2)*45 + (l//2)*9 + co), l=10 block (dropped by pool)
    # parked at cols 90..98.
    T2 = np.zeros((LP2 * C1 + 1, LOUT2 * C2), np.float32)
    for l in range(LOUT2):
        c0 = (LOUT2 - 1) * C2 if l == LOUT2 - 1 else \
            (l % 2) * (LPOOL2 * C2) + (l // 2) * C2
        for k in range(3):
            r0 = (l + k) * C1
            T2[r0:r0 + C1, c0:c0 + C2] = w2[:, :, k].T
        T2[LP2 * C1, c0:c0 + C2] = b2

    # conv2d_1 bands (one per kernel row kh): rows = (wp, ci) wp-major padded
    # to 256 (bias row at 180 = ones lane of the input slab).  Output cols
    # parity-ordered over w: col = (w%2)*128 + (w//2)*32 + co.
    M1 = np.zeros((3, WLANES, WLANES), np.float32)
    for kh in range(3):
        for w in range(HO1):
            c0 = (w % 2) * (HPOOL1 * C2D1) + (w // 2) * C2D1
            for kw in range(3):
                r0 = (w + kw) * CIN2D
                M1[kh, r0:r0 + CIN2D, c0:c0 + C2D1] = wa[:, :, kh, kw].T
    for w in range(HO1):
        c0 = (w % 2) * (HPOOL1 * C2D1) + (w // 2) * C2D1
        M1[0, HP1 * CIN2D, c0:c0 + C2D1] = ba          # bias row (kh=0 only)

    # conv2d_2 bands: rows = (wp, ci) for wp in [0,6) padded to 256 (bias row
    # at 192 = ones lane).  Cols parity-ordered: (w%2)*128 + (w//2)*64 + co.
    M2 = np.zeros((3, WLANES, WLANES), np.float32)
    for kh in range(3):
        for w in range(HO2):
            c0 = (w % 2) * (HPOOL2 * C2D2) + (w // 2) * C2D2
            for kw in range(3):
                r0 = (w + kw) * C2D1
                M2[kh, r0:r0 + C2D1, c0:c0 + C2D2] = wb[:, :, kh, kw].T
    for w in range(HO2):
        c0 = (w % 2) * (HPOOL2 * C2D2) + (w // 2) * C2D2
        M2[1, HP2 * C2D1, c0:c0 + C2D2] = bb           # bias row (kh=1 only)

    # fc: PyTorch flatten order (c, l); kernel produces (l, c).
    Wfc = np.asarray(p["fc_w"], np.float32).reshape(DIM, C2, LPOOL2)
    Wfc = Wfc.transpose(0, 2, 1).reshape(DIM, C2 * LPOOL2).T       # (45, 30)
    # fc2: PyTorch flatten order (c, h, w); kernel produces (h, w, c); split
    # into the h=0 / h=1 halves (the kernel keeps h in the rows until fc2).
    Wfc2 = np.asarray(p["fc2_w"], np.float32).reshape(128, C2D2, HPOOL2, HPOOL2)
    Wfc2 = Wfc2.transpose(0, 2, 3, 1).reshape(128, 256).T          # (256, 128)

    slab = np.zeros((W_ROWS, WLANES), np.float32)

    def put(name, a):
        a = np.asarray(a, np.float32)
        if a.ndim == 1:
            a = a.reshape(1, -1)
        o = W_OFF[name]
        slab[o:o + a.shape[0], :a.shape[1]] = a

    put("T1", T1)
    put("T2", T2)
    put("WFC", Wfc)
    put("BFC", p["fc_b"])
    put("M1", M1.reshape(3 * WLANES, WLANES))
    put("M2", M2.reshape(3 * WLANES, WLANES))
    put("W2A", Wfc2[:128])
    put("W2B", Wfc2[128:])
    put("BFC2", p["fc2_b"])
    put("WFC3", np.asarray(p["fc3_w"], np.float32).T)
    put("BFC3", p["fc3_b"])
    put("WFC4", np.asarray(p["fc4_w"], np.float32).T)
    put("BFC4", p["fc4_b"])
    return jnp.asarray(slab)


# ----------------------------------------------------------------------------
# Fused forward pass: one pallas_call, everything resident in VMEM, no scratch.
# ----------------------------------------------------------------------------
@functools.partial(jax.jit, static_argnums=(3,))
def hetnet_forward(wslab, data1, data2, T):
    n1, n2 = data1.shape[0], data2.shape[0]
    inv_t = 1.0 / float(T)
    f32 = jnp.float32
    r1 = 2 * HPOOL1 * n2        # conv2d_1 matmul rows = 8 * n2 (rows (p, q, n))
    r2 = HO2 * n2               # conv2d_2 matmul rows = 4 * n2 (rows (h, n))

    # ---- branch-1 input: zero-pad + trailing ones lane (feeds the bias row)
    x1in = jnp.concatenate(
        [jnp.pad(data1.reshape(n1, L_IN).astype(f32), ((0, 0), (2, 2))),
         jnp.ones((n1, 1), f32)], axis=1)                            # (n1, 21)

    # ---- branch-2 per-kh LHS slabs, rows ordered (h-parity p, h//2 q, sample)
    # so the h-pool inside the kernel is a single max of two contiguous halves.
    x2nhwc = jnp.transpose(data2.astype(f32), (0, 2, 3, 1))          # (n2,6,6,18)
    x2pad = jnp.pad(x2nhwc, ((0, 0), (2, 2), (2, 2), (0, 0)))        # (n2,10,10,18)
    x2rows = x2pad.reshape(n2, HP1, HP1 * CIN2D)                     # (n2,10,180)
    hsel = np.arange(2)[:, None] + 2 * np.arange(HPOOL1)[None, :]    # h = 2q + p
    slabs = []
    for kh in range(3):
        g = x2rows[:, hsel + kh, :]                                  # (n2,2,4,180)
        slabs.append(jnp.transpose(g, (1, 2, 0, 3)).reshape(r1, HP1 * CIN2D))
    l1 = jnp.stack(slabs, axis=0)                                    # (3, 8n2, 180)
    l1 = jnp.concatenate(
        [l1, jnp.ones((3, r1, 1), f32),
         jnp.zeros((3, r1, WLANES - HP1 * CIN2D - 1), f32)], axis=-1)  # (3,8n2,256)

    def kernel(x1_ref, l1_ref, w_ref, out_ref):
        def wget(name, nrows, ncols=WLANES):
            o = W_OFF[name]
            return w_ref[o:o + nrows, :ncols]

        # ---------------- branch 1: 1-D conv tower --------------------------
        # conv1d_1 + BN + ReLU (bias via ones lane), parity-ordered cols.
        y = jnp.dot(x1_ref[...], wget("T1", LP1 + 1, LOUT1 * C1),
                    preferred_element_type=f32)
        y = jnp.maximum(y, 0.0)                                      # (n1, 54)
        p1 = jnp.maximum(y[:, :LPOOL1 * C1],
                         y[:, LPOOL1 * C1:2 * LPOOL1 * C1])          # (n1, 27)
        # padded conv1d_2 input (lp, ci) + ones lane, as a value.
        lhs2 = jnp.concatenate(
            [jnp.zeros((n1, 2 * C1), f32), p1, jnp.zeros((n1, 2 * C1), f32),
             jnp.ones((n1, 1), f32)], axis=1)                        # (n1, 40)
        y = jnp.dot(lhs2, wget("T2", LP2 * C1 + 1, LOUT2 * C2),
                    preferred_element_type=f32)
        y = jnp.maximum(y, 0.0)                                      # (n1, 99)
        p2 = jnp.maximum(y[:, :LPOOL2 * C2],
                         y[:, LPOOL2 * C2:2 * LPOOL2 * C2])          # (n1, 45)
        # fc (dropout = identity) + L2 normalise (rsqrt on the EUP).
        x1 = jnp.dot(p2, wget("WFC", C2 * LPOOL2, DIM),
                     preferred_element_type=f32) + wget("BFC", 1, DIM)
        x1 = x1 * lax.rsqrt(jnp.maximum(
            jnp.sum(x1 * x1, axis=-1, keepdims=True), 1e-24))        # (n1, 30)

        # ---------------- branch 2: 2-D conv tower (batched) ----------------
        m1o = W_OFF["M1"]
        acc = jnp.dot(l1_ref[0], w_ref[m1o:m1o + WLANES, :],
                      preferred_element_type=f32)
        acc = acc + jnp.dot(l1_ref[1], w_ref[m1o + WLANES:m1o + 2 * WLANES, :],
                            preferred_element_type=f32)
        acc = acc + jnp.dot(l1_ref[2], w_ref[m1o + 2 * WLANES:m1o + 3 * WLANES, :],
                            preferred_element_type=f32)
        acc = jnp.maximum(acc, 0.0)                                  # (8n2, 256)
        # maxpool 2x2: h-pool = contiguous row halves (parity row order),
        # w-pool = contiguous lane halves (parity col order).
        hp = jnp.maximum(acc[:r1 // 2], acc[r1 // 2:])               # (4n2, 256)
        wpool = jnp.maximum(hp[:, :HPOOL1 * C2D1], hp[:, HPOOL1 * C2D1:])  # (4n2,128)

        # padded conv2d_2 input (wp, ci) + ones lane, rows stay (h, n).
        xw = jnp.concatenate(
            [jnp.zeros((r2, C2D1), f32), wpool, jnp.zeros((r2, C2D1), f32),
             jnp.ones((r2, 1), f32),
             jnp.zeros((r2, WLANES - HP2 * C2D1 - 1), f32)], axis=1)  # (4n2, 256)
        zrow = jnp.zeros((n2, WLANES), f32)
        xup = jnp.concatenate([zrow, xw[:r2 - n2]], axis=0)  # out row h <- in row h-1
        xdn = jnp.concatenate([xw[n2:], zrow], axis=0)       # out row h <- in row h+1
        m2o = W_OFF["M2"]
        acc2 = jnp.dot(xup, w_ref[m2o:m2o + WLANES, :],
                       preferred_element_type=f32)
        acc2 = acc2 + jnp.dot(xw, w_ref[m2o + WLANES:m2o + 2 * WLANES, :],
                              preferred_element_type=f32)
        acc2 = acc2 + jnp.dot(xdn, w_ref[m2o + 2 * WLANES:m2o + 3 * WLANES, :],
                              preferred_element_type=f32)
        acc2 = jnp.maximum(acc2, 0.0)                                # (4n2, 256)
        # w-pool (lane halves) then h-pool folded into the fc2 split.
        qv = jnp.maximum(acc2[:, :HPOOL2 * C2D2], acc2[:, HPOOL2 * C2D2:])  # (4n2,128)
        a = jnp.maximum(qv[:n2], qv[n2:2 * n2])                      # h-pair (0,1)
        b = jnp.maximum(qv[2 * n2:3 * n2], qv[3 * n2:])              # h-pair (2,3)

        # fc2(+ReLU) as two dots (h=0 / h=1 feature halves), then fc3, fc4.
        x2 = (jnp.dot(a, wget("W2A", 128, 128), preferred_element_type=f32)
              + jnp.dot(b, wget("W2B", 128, 128), preferred_element_type=f32)
              + wget("BFC2", 1, 128))
        x2 = jnp.maximum(x2, 0.0)
        x2 = jnp.dot(x2, wget("WFC3", 128, 2 * DIM),
                     preferred_element_type=f32) + wget("BFC3", 1, 2 * DIM)
        x2 = jnp.dot(x2, wget("WFC4", 2 * DIM, DIM),
                     preferred_element_type=f32) + wget("BFC4", 1, DIM)
        x2 = x2 * lax.rsqrt(jnp.maximum(
            jnp.sum(x2 * x2, axis=-1, keepdims=True), 1e-24))        # (n2, 30)

        # logits = (x2 @ x1.T) / T  (contraction on dim 1 of both operands).
        out_ref[...] = lax.dot_general(
            x2, x1, (((1,), (1,)), ((), ())),
            preferred_element_type=f32) * inv_t

    logits = pl.pallas_call(
        kernel,
        out_shape=jax.ShapeDtypeStruct((n2, n1), f32),
        in_specs=[pl.BlockSpec(memory_space=pltpu.MemorySpace.VMEM)] * 3,
        out_specs=pl.BlockSpec(memory_space=pltpu.MemorySpace.VMEM),
    )(x1in, l1, wslab)

    labels = jnp.arange(n1, dtype=jnp.int32)
    return logits, labels


# ----------------------------------------------------------------------------
# Deterministic synthetic parameters (same shapes as the PyTorch module)
# ----------------------------------------------------------------------------
def init_params(key):
    ks = jax.random.split(key, 20)

    def w(k, shape, scale=0.1):
        return (scale * jax.random.normal(k, shape)).astype(jnp.float32)

    def bn(n):
        return dict(gamma=jnp.ones((n,), jnp.float32),
                    beta=jnp.zeros((n,), jnp.float32),
                    mean=jnp.zeros((n,), jnp.float32),
                    var=jnp.ones((n,), jnp.float32))

    return {
        "conv1d_1_w": w(ks[0], (3, 1, 3)),   "conv1d_1_b": w(ks[1], (3,)),
        "bn1d_1": bn(3),
        "conv1d_2_w": w(ks[2], (9, 3, 3)),   "conv1d_2_b": w(ks[3], (9,)),
        "bn1d_2": bn(9),
        "conv2d_1_w": w(ks[4], (32, 18, 3, 3)), "conv2d_1_b": w(ks[5], (32,)),
        "bn2d_1": bn(32),
        "conv2d_2_w": w(ks[6], (64, 32, 3, 3)), "conv2d_2_b": w(ks[7], (64,)),
        "bn2d_2": bn(64),
        "fc_w": w(ks[8], (30, 45)),     "fc_b": w(ks[9], (30,)),
        "fc2_w": w(ks[10], (128, 256)), "fc2_b": w(ks[11], (128,)),
        "fc3_w": w(ks[12], (60, 128)),  "fc3_b": w(ks[13], (60,)),
        "fc4_w": w(ks[14], (30, 60)),   "fc4_b": w(ks[15], (30,)),
    }


# ----------------------------------------------------------------------------
# Plain-XLA reference (eval mode) used as a correctness check.
# ----------------------------------------------------------------------------
def _bn_apply(x, bn, eps=1e-5):
    shp = (1, -1) + (1,) * (x.ndim - 2)
    return ((x - bn["mean"].reshape(shp)) / jnp.sqrt(bn["var"].reshape(shp) + eps)
            * bn["gamma"].reshape(shp) + bn["beta"].reshape(shp))


def reference_forward(params, data1, data2, T):
    p = params
    hp = lax.Precision.HIGHEST

    x1 = lax.conv_general_dilated(data1, p["conv1d_1_w"], (1,), [(2, 2)],
                                  dimension_numbers=("NCH", "OIH", "NCH"),
                                  precision=hp) + p["conv1d_1_b"][None, :, None]
    x1 = jnp.maximum(_bn_apply(x1, p["bn1d_1"]), 0.0)
    x1 = lax.reduce_window(x1, -jnp.inf, lax.max, (1, 1, 2), (1, 1, 2), "VALID")
    x1 = lax.conv_general_dilated(x1, p["conv1d_2_w"], (1,), [(2, 2)],
                                  dimension_numbers=("NCH", "OIH", "NCH"),
                                  precision=hp) + p["conv1d_2_b"][None, :, None]
    x1 = jnp.maximum(_bn_apply(x1, p["bn1d_2"]), 0.0)
    x1 = lax.reduce_window(x1, -jnp.inf, lax.max, (1, 1, 2), (1, 1, 2), "VALID")
    x1 = x1.reshape(x1.shape[0], -1)
    x1 = jnp.dot(x1, p["fc_w"].T, precision=hp) + p["fc_b"]
    x1 = x1 / jnp.maximum(jnp.linalg.norm(x1, axis=1, keepdims=True), 1e-12)

    x2 = lax.conv_general_dilated(data2, p["conv2d_1_w"], (1, 1), [(2, 2), (2, 2)],
                                  dimension_numbers=("NCHW", "OIHW", "NCHW"),
                                  precision=hp) + p["conv2d_1_b"][None, :, None, None]
    x2 = jnp.maximum(_bn_apply(x2, p["bn2d_1"]), 0.0)
    x2 = lax.reduce_window(x2, -jnp.inf, lax.max, (1, 1, 2, 2), (1, 1, 2, 2), "VALID")
    x2 = lax.conv_general_dilated(x2, p["conv2d_2_w"], (1, 1), [(1, 1), (1, 1)],
                                  dimension_numbers=("NCHW", "OIHW", "NCHW"),
                                  precision=hp) + p["conv2d_2_b"][None, :, None, None]
    x2 = jnp.maximum(_bn_apply(x2, p["bn2d_2"]), 0.0)
    x2 = lax.reduce_window(x2, -jnp.inf, lax.max, (1, 1, 2, 2), (1, 1, 2, 2), "VALID")
    x2 = x2.reshape(x2.shape[0], -1)
    x2 = jnp.maximum(jnp.dot(x2, p["fc2_w"].T, precision=hp) + p["fc2_b"], 0.0)
    x2 = jnp.dot(x2, p["fc3_w"].T, precision=hp) + p["fc3_b"]
    x2 = jnp.dot(x2, p["fc4_w"].T, precision=hp) + p["fc4_b"]
    x2 = x2 / jnp.maximum(jnp.linalg.norm(x2, axis=1, keepdims=True), 1e-12)

    logits = jnp.dot(x2, x1.T, precision=hp) / T
    labels = jnp.arange(data1.shape[0], dtype=jnp.int32)
    return logits, labels


# ----------------------------------------------------------------------------
if __name__ == "__main__":
    key = jax.random.PRNGKey(0)
    kp, k1, k2 = jax.random.split(key, 3)
    params = init_params(kp)

    # data1: len 16 -> conv(pad2) 18 -> pool 9 -> conv(pad2) 11 -> pool 5 -> 9*5=45
    # data2: 6x6 -> conv(pad2) 8x8 -> pool 4x4 -> conv(pad1) 4x4 -> pool 2x2 -> 64*4=256
    N1, N2 = 4, 4
    data1 = jax.random.normal(k1, (N1, 1, 16), dtype=jnp.float32)
    data2 = jax.random.normal(k2, (N2, 18, 6, 6), dtype=jnp.float32)
    T = 0.07

    wslab = prepare_params(params)
    logits, labels = hetnet_forward(wslab, data1, data2, T)
    logits = jax.block_until_ready(logits)
    labels = jax.block_until_ready(labels)

    assert logits.shape == (N2, N1), logits.shape
    assert labels.shape == (N1,), labels.shape
    assert bool(jnp.all(jnp.isfinite(logits)))

    # correctness check vs. a plain-XLA implementation of the same eval-mode
    # net (tolerance tightened vs. the previous 5e-2; everything stays f32).
    ref_logits, _ = reference_forward(params, data1, data2, T)
    err = float(jnp.max(jnp.abs(logits - ref_logits)))
    assert err < 1e-2, f"mismatch vs reference: max abs err = {err}"

    print("KERNEL_OK")
</pallas_src>

<mosaic_0001>
module attributes {stable_mosaic.version = 11 : i64} {
  func.func @kernel(%arg0: memref<4x21xf32, #tpu.memory_space<vmem>>, %arg1: memref<3x32x256xf32, #tpu.memory_space<vmem>>, %arg2: memref<2128x256xf32, #tpu.memory_space<vmem>>, %arg3: memref<4x4xf32, #tpu.memory_space<vmem>>) attributes {dimension_semantics = [], scalar_prefetch = 0 : i64, scratch_operands = 0 : i64, tpu.core_type = #tpu.core_type<tc>} {
    %c0 = arith.constant 0 : index
    %c0_0 = arith.constant 0 : index
    %0 = vector.load %arg0[%c0, %c0_0] : memref<4x21xf32, #tpu.memory_space<vmem>>, vector<4x21xf32>
    %c0_1 = arith.constant 0 : index
    %c0_2 = arith.constant 0 : index
    %1 = vector.load %arg2[%c0_1, %c0_2] : memref<2128x256xf32, #tpu.memory_space<vmem>>, vector<21x54xf32>
    %cst = arith.constant dense<0.000000e+00> : vector<4x54xf32>
    %2 = tpu.matmul %0, %1, %cst {dimension_numbers = #tpu.dot_dimension_numbers<[1], [0], [0], [1], [0, 0, 1, 1], [], []>} : vector<4x21xf32>, vector<21x54xf32>, vector<4x54xf32> -> vector<4x54xf32>
    %cst_3 = arith.constant 0.000000e+00 : f32
    %3 = vector.broadcast %cst_3 : f32 to vector<4x54xf32>
    %4 = arith.maximumf %2, %3 : vector<4x54xf32>
    %5 = vector.extract_strided_slice %4 {offsets = [0, 0], sizes = [4, 27], strides = [1, 1]} : vector<4x54xf32> to vector<4x27xf32>
    %6 = vector.extract_strided_slice %4 {offsets = [0, 27], sizes = [4, 27], strides = [1, 1]} : vector<4x54xf32> to vector<4x27xf32>
    %7 = arith.maximumf %5, %6 : vector<4x27xf32>
    %cst_4 = arith.constant 0.000000e+00 : f32
    %8 = vector.broadcast %cst_4 : f32 to vector<4x6xf32>
    %cst_5 = arith.constant 0.000000e+00 : f32
    %9 = vector.broadcast %cst_5 : f32 to vector<4x6xf32>
    %cst_6 = arith.constant 1.000000e+00 : f32
    %10 = vector.broadcast %cst_6 : f32 to vector<4x1xf32>
    %11 = tpu.concatenate %8, %7, %9, %10 in 1 : vector<4x6xf32>, vector<4x27xf32>, vector<4x6xf32>, vector<4x1xf32> -> vector<4x40xf32>
    %c24 = arith.constant 24 : index
    %c0_7 = arith.constant 0 : index
    %12 = vector.load %arg2[%c24, %c0_7] : memref<2128x256xf32, #tpu.memory_space<vmem>>, vector<40x99xf32>
    %cst_8 = arith.constant dense<0.000000e+00> : vector<4x99xf32>
    %13 = tpu.matmul %11, %12, %cst_8 {dimension_numbers = #tpu.dot_dimension_numbers<[1], [0], [0], [1], [0, 0, 1, 1], [], []>} : vector<4x40xf32>, vector<40x99xf32>, vector<4x99xf32> -> vector<4x99xf32>
    %cst_9 = arith.constant 0.000000e+00 : f32
    %14 = vector.broadcast %cst_9 : f32 to vector<4x99xf32>
    %15 = arith.maximumf %13, %14 : vector<4x99xf32>
    %16 = vector.extract_strided_slice %15 {offsets = [0, 0], sizes = [4, 45], strides = [1, 1]} : vector<4x99xf32> to vector<4x45xf32>
    %17 = vector.extract_strided_slice %15 {offsets = [0, 45], sizes = [4, 45], strides = [1, 1]} : vector<4x99xf32> to vector<4x45xf32>
    %18 = arith.maximumf %16, %17 : vector<4x45xf32>
    %c64 = arith.constant 64 : index
    %c0_10 = arith.constant 0 : index
    %19 = vector.load %arg2[%c64, %c0_10] : memref<2128x256xf32, #tpu.memory_space<vmem>>, vector<45x30xf32>
    %cst_11 = arith.constant dense<0.000000e+00> : vector<4x30xf32>
    %20 = tpu.matmul %18, %19, %cst_11 {dimension_numbers = #tpu.dot_dimension_numbers<[1], [0], [0], [1], [0, 0, 1, 1], [], []>} : vector<4x45xf32>, vector<45x30xf32>, vector<4x30xf32> -> vector<4x30xf32>
    %c112 = arith.constant 112 : index
    %c0_12 = arith.constant 0 : index
    %21 = vector.load %arg2[%c112, %c0_12] : memref<2128x256xf32, #tpu.memory_space<vmem>>, vector<1x30xf32>
    %22 = vector.broadcast %21 : vector<1x30xf32> to vector<4x30xf32>
    %23 = arith.addf %20, %22 : vector<4x30xf32>
    %24 = arith.mulf %23, %23 : vector<4x30xf32>
    %cst_13 = arith.constant dense<0.000000e+00> : vector<4xf32>
    %25 = vector.multi_reduction <add>, %24, %cst_13 [1] : vector<4x30xf32> to vector<4xf32>
    %26 = vector.shape_cast %25 : vector<4xf32> to vector<4x1xf32>
    %cst_14 = arith.constant 1.000000e-24 : f32
    %27 = vector.broadcast %cst_14 : f32 to vector<4x1xf32>
    %28 = arith.maximumf %26, %27 : vector<4x1xf32>
    %29 = math.rsqrt %28 : vector<4x1xf32>
    %30 = vector.broadcast %29 : vector<4x1xf32> to vector<4x30xf32>
    %31 = arith.mulf %23, %30 : vector<4x30xf32>
    %c0_15 = arith.constant 0 : index
    %c0_16 = arith.constant 0 : index
    %c0_17 = arith.constant 0 : index
    %32 = vector.load %arg1[%c0_15, %c0_16, %c0_17] : memref<3x32x256xf32, #tpu.memory_space<vmem>>, vector<1x32x256xf32>
    %33 = vector.shape_cast %32 : vector<1x32x256xf32> to vector<32x256xf32>
    %c120 = arith.constant 120 : index
    %c0_18 = arith.constant 0 : index
    %34 = vector.load %arg2[%c120, %c0_18] : memref<2128x256xf32, #tpu.memory_space<vmem>>, vector<256x256xf32>
    %cst_19 = arith.constant dense<0.000000e+00> : vector<32x256xf32>
    %35 = tpu.matmul %33, %34, %cst_19 {dimension_numbers = #tpu.dot_dimension_numbers<[1], [0], [0], [1], [0, 0, 1, 1], [], []>} : vector<32x256xf32>, vector<256x256xf32>, vector<32x256xf32> -> vector<32x256xf32>
    %c1 = arith.constant 1 : index
    %c0_20 = arith.constant 0 : index
    %c0_21 = arith.constant 0 : index
    %36 = vector.load %arg1[%c1, %c0_20, %c0_21] : memref<3x32x256xf32, #tpu.memory_space<vmem>>, vector<1x32x256xf32>
    %37 = vector.shape_cast %36 : vector<1x32x256xf32> to vector<32x256xf32>
    %c376 = arith.constant 376 : index
    %c0_22 = arith.constant 0 : index
    %38 = vector.load %arg2[%c376, %c0_22] : memref<2128x256xf32, #tpu.memory_space<vmem>>, vector<256x256xf32>
    %cst_23 = arith.constant dense<0.000000e+00> : vector<32x256xf32>
    %39 = tpu.matmul %37, %38, %cst_23 {dimension_numbers = #tpu.dot_dimension_numbers<[1], [0], [0], [1], [0, 0, 1, 1], [], []>} : vector<32x256xf32>, vector<256x256xf32>, vector<32x256xf32> -> vector<32x256xf32>
    %40 = arith.addf %35, %39 : vector<32x256xf32>
    %c2 = arith.constant 2 : index
    %c0_24 = arith.constant 0 : index
    %c0_25 = arith.constant 0 : index
    %41 = vector.load %arg1[%c2, %c0_24, %c0_25] : memref<3x32x256xf32, #tpu.memory_space<vmem>>, vector<1x32x256xf32>
    %42 = vector.shape_cast %41 : vector<1x32x256xf32> to vector<32x256xf32>
    %c632 = arith.constant 632 : index
    %c0_26 = arith.constant 0 : index
    %43 = vector.load %arg2[%c632, %c0_26] : memref<2128x256xf32, #tpu.memory_space<vmem>>, vector<256x256xf32>
    %cst_27 = arith.constant dense<0.000000e+00> : vector<32x256xf32>
    %44 = tpu.matmul %42, %43, %cst_27 {dimension_numbers = #tpu.dot_dimension_numbers<[1], [0], [0], [1], [0, 0, 1, 1], [], []>} : vector<32x256xf32>, vector<256x256xf32>, vector<32x256xf32> -> vector<32x256xf32>
    %45 = arith.addf %40, %44 : vector<32x256xf32>
    %cst_28 = arith.constant 0.000000e+00 : f32
    %46 = vector.broadcast %cst_28 : f32 to vector<32x256xf32>
    %47 = arith.maximumf %45, %46 : vector<32x256xf32>
    %48 = vector.extract_strided_slice %47 {offsets = [0, 0], sizes = [16, 256], strides = [1, 1]} : vector<32x256xf32> to vector<16x256xf32>
    %49 = vector.extract_strided_slice %47 {offsets = [16, 0], sizes = [16, 256], strides = [1, 1]} : vector<32x256xf32> to vector<16x256xf32>
    %50 = arith.maximumf %48, %49 : vector<16x256xf32>
    %51 = vector.extract_strided_slice %50 {offsets = [0, 0], sizes = [16, 128], strides = [1, 1]} : vector<16x256xf32> to vector<16x128xf32>
    %52 = vector.extract_strided_slice %50 {offsets = [0, 128], sizes = [16, 128], strides = [1, 1]} : vector<16x256xf32> to vector<16x128xf32>
    %53 = arith.maximumf %51, %52 : vector<16x128xf32>
    %cst_29 = arith.constant 0.000000e+00 : f32
    %54 = vector.broadcast %cst_29 : f32 to vector<16x32xf32>
    %cst_30 = arith.constant 0.000000e+00 : f32
    %55 = vector.broadcast %cst_30 : f32 to vector<16x32xf32>
    %cst_31 = arith.constant 1.000000e+00 : f32
    %56 = vector.broadcast %cst_31 : f32 to vector<16x1xf32>
    %cst_32 = arith.constant 0.000000e+00 : f32
    %57 = vector.broadcast %cst_32 : f32 to vector<16x63xf32>
    %58 = tpu.concatenate %54, %53, %55, %56, %57 in 1 : vector<16x32xf32>, vector<16x128xf32>, vector<16x32xf32>, vector<16x1xf32>, vector<16x63xf32> -> vector<16x256xf32>
    %cst_33 = arith.constant 0.000000e+00 : f32
    %59 = vector.broadcast %cst_33 : f32 to vector<4x256xf32>
    %60 = vector.extract_strided_slice %58 {offsets = [0, 0], sizes = [12, 256], strides = [1, 1]} : vector<16x256xf32> to vector<12x256xf32>
    %61 = tpu.concatenate %59, %60 in 0 : vector<4x256xf32>, vector<12x256xf32> -> vector<16x256xf32>
    %62 = vector.extract_strided_slice %58 {offsets = [4, 0], sizes = [12, 256], strides = [1, 1]} : vector<16x256xf32> to vector<12x256xf32>
    %63 = tpu.concatenate %62, %59 in 0 : vector<12x256xf32>, vector<4x256xf32> -> vector<16x256xf32>
    %c888 = arith.constant 888 : index
    %c0_34 = arith.constant 0 : index
    %64 = vector.load %arg2[%c888, %c0_34] : memref<2128x256xf32, #tpu.memory_space<vmem>>, vector<256x256xf32>
    %cst_35 = arith.constant dense<0.000000e+00> : vector<16x256xf32>
    %65 = tpu.matmul %61, %64, %cst_35 {dimension_numbers = #tpu.dot_dimension_numbers<[1], [0], [0], [1], [0, 0, 1, 1], [], []>} : vector<16x256xf32>, vector<256x256xf32>, vector<16x256xf32> -> vector<16x256xf32>
    %c1144 = arith.constant 1144 : index
    %c0_36 = arith.constant 0 : index
    %66 = vector.load %arg2[%c1144, %c0_36] : memref<2128x256xf32, #tpu.memory_space<vmem>>, vector<256x256xf32>
    %cst_37 = arith.constant dense<0.000000e+00> : vector<16x256xf32>
    %67 = tpu.matmul %58, %66, %cst_37 {dimension_numbers = #tpu.dot_dimension_numbers<[1], [0], [0], [1], [0, 0, 1, 1], [], []>} : vector<16x256xf32>, vector<256x256xf32>, vector<16x256xf32> -> vector<16x256xf32>
    %68 = arith.addf %65, %67 : vector<16x256xf32>
    %c1400 = arith.constant 1400 : index
    %c0_38 = arith.constant 0 : index
    %69 = vector.load %arg2[%c1400, %c0_38] : memref<2128x256xf32, #tpu.memory_space<vmem>>, vector<256x256xf32>
    %cst_39 = arith.constant dense<0.000000e+00> : vector<16x256xf32>
    %70 = tpu.matmul %63, %69, %cst_39 {dimension_numbers = #tpu.dot_dimension_numbers<[1], [0], [0], [1], [0, 0, 1, 1], [], []>} : vector<16x256xf32>, vector<256x256xf32>, vector<16x256xf32> -> vector<16x256xf32>
    %71 = arith.addf %68, %70 : vector<16x256xf32>
    %cst_40 = arith.constant 0.000000e+00 : f32
    %72 = vector.broadcast %cst_40 : f32 to vector<16x256xf32>
    %73 = arith.maximumf %71, %72 : vector<16x256xf32>
    %74 = vector.extract_strided_slice %73 {offsets = [0, 0], sizes = [16, 128], strides = [1, 1]} : vector<16x256xf32> to vector<16x128xf32>
    %75 = vector.extract_strided_slice %73 {offsets = [0, 128], sizes = [16, 128], strides = [1, 1]} : vector<16x256xf32> to vector<16x128xf32>
    %76 = arith.maximumf %74, %75 : vector<16x128xf32>
    %77 = vector.extract_strided_slice %76 {offsets = [0, 0], sizes = [4, 128], strides = [1, 1]} : vector<16x128xf32> to vector<4x128xf32>
    %78 = vector.extract_strided_slice %76 {offsets = [4, 0], sizes = [4, 128], strides = [1, 1]} : vector<16x128xf32> to vector<4x128xf32>
    %79 = arith.maximumf %77, %78 : vector<4x128xf32>
    %80 = vector.extract_strided_slice %76 {offsets = [8, 0], sizes = [4, 128], strides = [1, 1]} : vector<16x128xf32> to vector<4x128xf32>
    %81 = vector.extract_strided_slice %76 {offsets = [12, 0], sizes = [4, 128], strides = [1, 1]} : vector<16x128xf32> to vector<4x128xf32>
    %82 = arith.maximumf %80, %81 : vector<4x128xf32>
    %c1656 = arith.constant 1656 : index
    %c0_41 = arith.constant 0 : index
    %83 = vector.load %arg2[%c1656, %c0_41] : memref<2128x256xf32, #tpu.memory_space<vmem>>, vector<128x128xf32>
    %cst_42 = arith.constant dense<0.000000e+00> : vector<4x128xf32>
    %84 = tpu.matmul %79, %83, %cst_42 {dimension_numbers = #tpu.dot_dimension_numbers<[1], [0], [0], [1], [0, 0, 1, 1], [], []>} : vector<4x128xf32>, vector<128x128xf32>, vector<4x128xf32> -> vector<4x128xf32>
    %c1784 = arith.constant 1784 : index
    %c0_43 = arith.constant 0 : index
    %85 = vector.load %arg2[%c1784, %c0_43] : memref<2128x256xf32, #tpu.memory_space<vmem>>, vector<128x128xf32>
    %cst_44 = arith.constant dense<0.000000e+00> : vector<4x128xf32>
    %86 = tpu.matmul %82, %85, %cst_44 {dimension_numbers = #tpu.dot_dimension_numbers<[1], [0], [0], [1], [0, 0, 1, 1], [], []>} : vector<4x128xf32>, vector<128x128xf32>, vector<4x128xf32> -> vector<4x128xf32>
    %87 = arith.addf %84, %86 : vector<4x128xf32>
    %c1912 = arith.constant 1912 : index
    %c0_45 = arith.constant 0 : index
    %88 = vector.load %arg2[%c1912, %c0_45] : memref<2128x256xf32, #tpu.memory_space<vmem>>, vector<1x128xf32>
    %89 = vector.broadcast %88 : vector<1x128xf32> to vector<4x128xf32>
    %90 = arith.addf %87, %89 : vector<4x128xf32>
    %cst_46 = arith.constant 0.000000e+00 : f32
    %91 = vector.broadcast %cst_46 : f32 to vector<4x128xf32>
    %92 = arith.maximumf %90, %91 : vector<4x128xf32>
    %c1920 = arith.constant 1920 : index
    %c0_47 = arith.constant 0 : index
    %93 = vector.load %arg2[%c1920, %c0_47] : memref<2128x256xf32, #tpu.memory_space<vmem>>, vector<128x60xf32>
    %cst_48 = arith.constant dense<0.000000e+00> : vector<4x60xf32>
    %94 = tpu.matmul %92, %93, %cst_48 {dimension_numbers = #tpu.dot_dimension_numbers<[1], [0], [0], [1], [0, 0, 1, 1], [], []>} : vector<4x128xf32>, vector<128x60xf32>, vector<4x60xf32> -> vector<4x60xf32>
    %c2048 = arith.constant 2048 : index
    %c0_49 = arith.constant 0 : index
    %95 = vector.load %arg2[%c2048, %c0_49] : memref<2128x256xf32, #tpu.memory_space<vmem>>, vector<1x60xf32>
    %96 = vector.broadcast %95 : vector<1x60xf32> to vector<4x60xf32>
    %97 = arith.addf %94, %96 : vector<4x60xf32>
    %c2056 = arith.constant 2056 : index
    %c0_50 = arith.constant 0 : index
    %98 = vector.load %arg2[%c2056, %c0_50] : memref<2128x256xf32, #tpu.memory_space<vmem>>, vector<60x30xf32>
    %cst_51 = arith.constant dense<0.000000e+00> : vector<4x30xf32>
    %99 = tpu.matmul %97, %98, %cst_51 {dimension_numbers = #tpu.dot_dimension_numbers<[1], [0], [0], [1], [0, 0, 1, 1], [], []>} : vector<4x60xf32>, vector<60x30xf32>, vector<4x30xf32> -> vector<4x30xf32>
    %c2120 = arith.constant 2120 : index
    %c0_52 = arith.constant 0 : index
    %100 = vector.load %arg2[%c2120, %c0_52] : memref<2128x256xf32, #tpu.memory_space<vmem>>, vector<1x30xf32>
    %101 = vector.broadcast %100 : vector<1x30xf32> to vector<4x30xf32>
    %102 = arith.addf %99, %101 : vector<4x30xf32>
    %103 = arith.mulf %102, %102 : vector<4x30xf32>
    %cst_53 = arith.constant dense<0.000000e+00> : vector<4xf32>
    %104 = vector.multi_reduction <add>, %103, %cst_53 [1] : vector<4x30xf32> to vector<4xf32>
    %105 = vector.shape_cast %104 : vector<4xf32> to vector<4x1xf32>
    %cst_54 = arith.constant 1.000000e-24 : f32
    %106 = vector.broadcast %cst_54 : f32 to vector<4x1xf32>
    %107 = arith.maximumf %105, %106 : vector<4x1xf32>
    %108 = math.rsqrt %107 : vector<4x1xf32>
    %109 = vector.broadcast %108 : vector<4x1xf32> to vector<4x30xf32>
    %110 = arith.mulf %102, %109 : vector<4x30xf32>
    %cst_55 = arith.constant dense<0.000000e+00> : vector<4x4xf32>
    %111 = tpu.matmul %110, %31, %cst_55 {dimension_numbers = #tpu.dot_dimension_numbers<[1], [1], [0], [0], [0, 0, 1, 0], [], []>} : vector<4x30xf32>, vector<4x30xf32>, vector<4x4xf32> -> vector<4x4xf32>
    %cst_56 = arith.constant 14.2857141 : f32
    %112 = vector.broadcast %cst_56 : f32 to vector<4x4xf32>
    %113 = arith.mulf %111, %112 : vector<4x4xf32>
    %c0_57 = arith.constant 0 : index
    %c0_58 = arith.constant 0 : index
    %114 = vector.load %arg3[%c0_57, %c0_58] : memref<4x4xf32, #tpu.memory_space<vmem>>, vector<4x4xf32>
    tpu.vector_store %arg3[%c0_57, %c0_58], %113 {strides = array<i32>} : memref<4x4xf32, #tpu.memory_space<vmem>>, vector<4x4xf32>,
    return
  }
}

</mosaic_0001>

<bundles_post_ra>
// kernel: hetnet_forward.1
= control target key start
LH: loop header
LB: loop body
LE: loop exit
PB: predicated region body
PF: predicated region fallthrough
CT: control target
= control target key end

     0   :  { %8 = vsyncpa [#allocation3], 0  ;;  %s2869_s0 = inlined_call_operand.vmem [shape: f32[4,21], index: 0, kind: input, shape index: {}]   ;;  %s2870_s1 = inlined_call_operand.vmem [shape: f32[3,32,256], index: 1, kind: input, shape index: {}]   ;;  %s2871_s2 = inlined_call_operand.hbm [shape: f32[2128,256], index: 2, kind: input, shape index: {}]   ;;  %s2872_s3 = inlined_call_operand.hbm [shape: f32[4,4], index: 3, kind: output, shape index: {}]  }
   0x1   :  { %9 = vsyncpa [#allocation4], 0  ;;  %s2600_s12 = smov [#allocation2]   ;;  %s2552_s16 = scalar_lea.hbm %s2871_s2, 68096 }
   0x2   :  { %s19_s13 = sshll.u32 %s2600_s12, 4  ;;  %p2553_p0 = scmp.ne.s32.totalorder %s2871_s2, %s2552_s16  ;;  %s20_s13 = int_to_ptr.vmem [resolvable:$true] %s19_s13 }
   0x3   :  { %p2556_p1 = scmp.lt.u32.totalorder %s2552_s16, %s2871_s2 }
   0x5   :  { %p2558_p2 = pnand %p2556_p1, %p2553_p0 }
   0x7   :  { %2561 = shalt.err (!%p2558_p2)
}
   0x8   :  { %s2562_s21 = scalar_lea.vmem %s20_s13, 68096  ;;  %p2567_p4 = scmp.lt.s32.totalorder %s20_s13, %s20_s13 }
   0x9   :  { %p2563_p3 = scmp.ne.s32.totalorder %s20_s13, %s2562_s21  ;;  %p2568_p5 = scmp.lt.s32.totalorder %s2562_s21, %s2562_s21 }
   0xb   :  { %p2569_p6 = por %p2568_p5, %p2567_p4 }
   0xd   :  { %p2570_p7 = pnand %p2569_p6, %p2563_p3 }
   0xf   :  { %2573 = shalt.err (!%p2570_p7)
}
  0x10   :  { %s2601_s22 = smov 256   ;;  %s2602_s23 = smov 16  }
  0x11   :  { %25 = dma.hbm_to_vmem [thread:$0]  %s2871_s2, 68096, %s20_s13, [#allocation3], %s2601_s22, %s2601_s22, %s2602_s23  }
  0x12   :  { %2596 = dma.done.wait [#allocation3], 68096  }
  0x13   :  { %2597 = vsyncadd [#allocation3], 4294899200  ;;  %v2603_v0 = vmov 0.0|0.0   ;;  %vm2604_vm0 = vmmov 0   ;;  %v2605_v1 = vmov 0.0   ;;  %v30_v2 = vld [vmem:[#allocation2] sm:$0xff] }
  0x14   :  { %2024 = vmatprep.subr.bf16.mxu0 %v2603_v0  ;;  %2027 = vmatprep.subr.bf16.mxu1 %v2603_v0  ;;  %v31_v3 = vld [vmem:[#allocation2 + $0x10] sm:$0xff]  ;;  %v32_v5 = vld [vmem:[#allocation2 + $0x20] sm:$0x1f]  ;;  %vm37_vm1 = vcmask 1044480   ;;  %vm33_vm2 = vcmask 171008   ;;  %v386_v16 = vld [vmem:[#allocation2 + $0x2f8] sm:$0xff] }
  0x15   :  { %1864 = vmatprep.mubr.msk.f32.mxu0 %vm2604_vm0, %v2605_v1  ;;  %1877 = vmatprep.mubr.msk.f32.mxu1 %vm2604_vm0, %v2605_v1  ;;  %v2025_v4 = vpack.c.bf16 %v31_v3, %v30_v2  ;;  %v29_v6 = vld [vmem:[%s2869_s0] sm:$0xf]  ;;  %v127_v7 = vld [vmem:[#allocation2 + $0x30] sm:$0xff]  ;;  %s2606_s0 = smov 101   ;;  %v388_v17 = vld [vmem:[#allocation2 + $0x308] sm:$0xff]  ;;  %s2607_s27 = smov 6  }
  0x16   :  { %v128_v8 = vld [vmem:[#allocation2 + $0x40] sm:$0xff]  ;;  %v129_v9 = vld [vmem:[#allocation2 + $0x50] sm:$0xff]  ;;  %v2043_v19 = vpack.c.bf16 %v388_v17, %v386_v16  ;;  %vm121_vm3 = vcmask 48128   ;;  %vm123_vm4 = vcmask 269312   ;;  %v390_v24 = vld [vmem:[#allocation2 + $0x318] sm:$0xff]  ;;  %vm125_vm5 = vcmask 318464  }
  0x17   :  { %2026 = vmatpush3.bf16.msra.mxu0 %v2025_v4  ;;  %v2028_v10 = vpack.c.bf16 %v128_v8, %v127_v7  ;;  %v130_v11 = vld [vmem:[#allocation2 + $0x60] sm:$0xff]  ;;  %v131_v18 = vld [vmem:[#allocation2 + $0x70] sm:$0xff]  ;;  %v392_v25 = vld [vmem:[#allocation2 + $0x328] sm:$0xff]  ;;  %vm132_vm6 = vcmask 326656   ;;  %vm2608_vm7 = vmmov 1   ;;  %s2609_s20 = smov 83  }
  0x18   :  { %1862 = vmatprep.subr.mxu0 %v2605_v1  ;;  %v2031_v12 = vpack.c.bf16 %v130_v11, %v129_v9  ;;  %v385_v22 = vld [vmem:[#allocation2 + $0x2f0] sm:$0xff]  ;;  %v387_v23 = vld [vmem:[#allocation2 + $0x300] sm:$0xff]  ;;  %v2047_v30 = vpack.c.bf16 %v392_v25, %v390_v24  ;;  %v1748_v33 = vld [vmem:[%s2870_s1 + $0x48] sm:$0xff]  ;;  %vm219_vm9 = vcmask 367616   ;;  %vm819_vm10 = vcmask 261120   ;;  %s2611_s21 = smov [#allocation5]  }
  0x19   :  { %2029 = vmatpush3.bf16.msra.mxu1 %v2028_v10  ;;  %v2045_v28 = vpack.c.bf16 %v387_v23, %v385_v22  ;;  %v389_v31 = vld [vmem:[#allocation2 + $0x310] sm:$0xff]  ;;  %v391_v32 = vld [vmem:[#allocation2 + $0x320] sm:$0xff]  ;;  %v394_v35 = vld [vmem:[#allocation2 + $0x338] sm:$0xff]  ;;  %vm824_vm11 = vcmask 523264   ;;  %vm827_vm12 = vcmask 531456   ;;  %vm834_vm14 = vcmask 1043456  }
  0x1a   :  { %2030 = vmatprep.subr.bf16.mxu1 %v2603_v0  ;;  %v396_v36 = vld [vmem:[#allocation2 + $0x348] sm:$0xff]  ;;  %v2049_v37 = vpack.c.bf16 %v391_v32, %v389_v31  ;;  %v393_v39 = vld [vmem:[#allocation2 + $0x330] sm:$0xff]  ;;  %v395_v40 = vld [vmem:[#allocation2 + $0x340] sm:$0xff]  ;;  %s1733_s22 = sshll.u32 %s2611_s21, 4  ;;  %s1734_s22 = int_to_ptr.vmem [resolvable:$true] %s1733_s22 }
  0x1b   :  { %1863 = vmatpush3.msk.msra.mxu0 %vm37_vm1, %v32_v5  ;;  %v2051_v38 = vpack.c.bf16 %v396_v36, %v394_v35  ;;  %v398_v41 = vld [vmem:[#allocation2 + $0x358] sm:$0xff]  ;;  %v400_v42 = vld [vmem:[#allocation2 + $0x368] sm:$0xff]  ;;  %v2053_v43 = vpack.c.bf16 %v395_v40, %v393_v39  ;;  %v397_v45 = vld [vmem:[#allocation2 + $0x350] sm:$0xff]  ;;  %s2574_s23 = scalar_lea.vmem %s1734_s22, 64  ;;  %p2579_p9 = scmp.lt.s32.totalorder %s1734_s22, %s1734_s22 }
  0x1c   :  { %1865 = vmatmul.mubr.msk.f32.vlgmr.msra.gmra.mrb[0].mxu0 %vm33_vm2, %v29_v6  ;;  %2033 = vmatprep.subr.bf16.mxu0 %v2603_v0  ;;  %v2055_v44 = vpack.c.bf16 %v400_v42, %v398_v41  ;;  %v399_v46 = vld [vmem:[#allocation2 + $0x360] sm:$0xff]  ;;  %v402_v47 = vld [vmem:[#allocation2 + $0x378] sm:$0xff]  ;;  %v404_v48 = vld [vmem:[#allocation2 + $0x388] sm:$0xff]  ;;  %p2575_p8 = scmp.ne.s32.totalorder %s1734_s22, %s2574_s23  ;;  %p2580_p10 = scmp.lt.s32.totalorder %s2574_s23, %s2574_s23 }
  0x1d   :  { %1892 = vmatprep.mubr.msk.f32.mxu0 %vm2604_vm0, %v2605_v1  ;;  %2032 = vmatpush3.bf16.msra.mxu1 %v2031_v12  ;;  %v2057_v49 = vpack.c.bf16 %v399_v46, %v397_v45  ;;  %v2059_v50 = vpack.c.bf16 %v404_v48, %v402_v47  ;;  %v401_v51 = vld [vmem:[#allocation2 + $0x370] sm:$0xff]  ;;  %v403_v52 = vld [vmem:[#allocation2 + $0x380] sm:$0xff]  ;;  %v406_v53 = vld [vmem:[#allocation2 + $0x398] sm:$0xff] }
  0x1e   :  { %1875 = vmatprep.subr.mxu1 %v2605_v1  ;;  %v408_v54 = vld [vmem:[#allocation2 + $0x3a8] sm:$0xff]  ;;  %v2061_v55 = vpack.c.bf16 %v403_v52, %v401_v51  ;;  %v405_v57 = vld [vmem:[#allocation2 + $0x390] sm:$0xff]  ;;  %v407_v58 = vld [vmem:[#allocation2 + $0x3a0] sm:$0xff]  ;;  %p2581_p11 = por %p2580_p10, %p2579_p9 }
  0x1f   :  { %v2063_v56 = vpack.c.bf16 %v408_v54, %v406_v53  ;;  %v410_v59 = vld [vmem:[#allocation2 + $0x3b8] sm:$0xff]  ;;  %v412_v60 = vld [vmem:[#allocation2 + $0x3c8] sm:$0xff]  ;;  %v2065_v61 = vpack.c.bf16 %v407_v58, %v405_v57  ;;  %v409_v63 = vld [vmem:[#allocation2 + $0x3b0] sm:$0xff] }
  0x20   :  { %v2067_v62 = vpack.c.bf16 %v412_v60, %v410_v59  ;;  %v411_v2 = vld [vmem:[#allocation2 + $0x3c0] sm:$0xff]  ;;  %v414_v3 = vld [vmem:[#allocation2 + $0x3d8] sm:$0xff]  ;;  %v416_v4 = vld [vmem:[#allocation2 + $0x3e8] sm:$0xff]  ;;  %p2582_p12 = pnand %p2581_p11, %p2575_p8 }
  0x21   :  { %1876 = vmatpush3.msra.mxu1 %v131_v18  ;;  %v2069_v5 = vpack.c.bf16 %v411_v2, %v409_v63  ;;  %v2071_v6 = vpack.c.bf16 %v416_v4, %v414_v3  ;;  %v413_v7 = vld [vmem:[#allocation2 + $0x3d0] sm:$0xff]  ;;  %v415_v8 = vld [vmem:[#allocation2 + $0x3e0] sm:$0xff]  ;;  %v418_v9 = vld [vmem:[#allocation2 + $0x3f8] sm:$0xff] }
  0x22   :  { %2044 = vmatprep.subr.bf16.mxu1 %v2043_v19  ;;  %v420_v10 = vld [vmem:[#allocation2 + $0x408] sm:$0xff]  ;;  %v2073_v11 = vpack.c.bf16 %v415_v8, %v413_v7  ;;  %v421_v19 = vld [vmem:[#allocation2 + $0x410] sm:$0xff]  ;;  %v431_v32 = vld [vmem:[#allocation2 + $0x460] sm:$0xff] }
  0x23   :  { %v2075_v12 = vpack.c.bf16 %v420_v10, %v418_v9  ;;  %v424_v16 = vld [vmem:[#allocation2 + $0x428] sm:$0xff]  ;;  %v425_v25 = vld [vmem:[#allocation2 + $0x430] sm:$0xff]  ;;  %v438_v39 = vld [vmem:[#allocation2 + $0x498] sm:$0xff] }
  0x24   :  { %v428_v22 = vld [vmem:[#allocation2 + $0x448] sm:$0xff]  ;;  %v429_v31 = vld [vmem:[#allocation2 + $0x450] sm:$0xff]  ;;  %v442_v45 = vld [vmem:[#allocation2 + $0x4b8] sm:$0xff] }
  0x25   :  { %v2089_v35 = vpack.c.bf16 %v431_v32, %v429_v31  ;;  %v440_v40 = vld [vmem:[#allocation2 + $0x4a8] sm:$0xff]  ;;  %v446_v51 = vld [vmem:[#allocation2 + $0x4d8] sm:$0xff]  ;;  %v1747_v3 = vld [vmem:[%s2870_s1 + $0x40] sm:$0xff] }
  0x26   :  { %v2095_v42 = vpack.c.bf16 %v440_v40, %v438_v39  ;;  %v444_v46 = vld [vmem:[#allocation2 + $0x4c8] sm:$0xff]  ;;  %v313_v57 = vld [vmem:[#allocation2 + $0xf8] sm:$0xff]  ;;  %v318_v7 = vld [vmem:[#allocation2 + $0x120] sm:$0xff] }
  0x27   :  { %v2099_v48 = vpack.c.bf16 %v444_v46, %v442_v45  ;;  %v448_v52 = vld [vmem:[#allocation2 + $0x4e8] sm:$0xff]  ;;  %v317_v63 = vld [vmem:[#allocation2 + $0x118] sm:$0xff]  ;;  %v330_v31 = vld [vmem:[#allocation2 + $0x180] sm:$0xff] }
  0x28   :  { %v2103_v54 = vpack.c.bf16 %v448_v52, %v446_v51  ;;  %v315_v58 = vld [vmem:[#allocation2 + $0x108] sm:$0xff]  ;;  %v1750_v8 = vld [vmem:[%s2870_s1 + $0x58] sm:$0xff]  ;;  %v212_v51 = vld [vmem:[#allocation2 + $0x80] sm:$0xff] }
  0x29   :  { %v2107_v60 = vpack.c.bf16 %v315_v58, %v313_v57  ;;  %v319_v2 = vld [vmem:[#allocation2 + $0x128] sm:$0xff]  ;;  %v321_v9 = vld [vmem:[#allocation2 + $0x138] sm:$0xff]  ;;  %v213_v52 = vld [vmem:[#allocation2 + $0x90] sm:$0xff] }
  0x2a   :  { %v323_v10 = vld [vmem:[#allocation2 + $0x148] sm:$0xff]  ;;  %v337_v39 = vld [vmem:[#allocation2 + $0x1b8] sm:$0xff]  ;;  %v215_v57 = vld [vmem:[#allocation2 + $0xb0] sm:$0xff] }
  0x2b   :  { %v305_v32 = vld [vmem:[%s2870_s1 + $0x8] sm:$0xff]  ;;  %v341_v45 = vld [vmem:[#allocation2 + $0x1d8] sm:$0xff]  ;;  %vm2041_vm8 = vmpackc.low %vm37_vm1, %vm2608_vm7  ;;  %vm297_vm1 = vcmask 240640  }
  0x2c   :  { %v339_v40 = vld [vmem:[#allocation2 + $0x1c8] sm:$0xff]  ;;  %vm2744_vm13 = vmneg %vm819_vm10 }
  0x2d   :  { %v343_v46 = vld [vmem:[#allocation2 + $0x1e8] sm:$0xff]  ;;  %vm2764_vm15 = vmneg %vm834_vm14 }
  0x2e   :  { %vm2510_vm2 = vmpackc.low %vm834_vm14, %vm2608_vm7 }
  0xef   :  { %v107_v13 = vpop.f32.mrb[0].mxu0 }
  0xf0   :  { %v111_v14 = vmax.f32 %v107_v13, 0.0  ;;  %v1866_v15 = vpop.f32.mrb[1].mxu0  ;;  %v417_v13 = vld [vmem:[#allocation2 + $0x3f0] sm:$0xff] }
  0xf1   :  { %v422_v15 = vld [vmem:[#allocation2 + $0x418] sm:$0xff] }
  0xf2   :  { %113 = vrot.lane.b32.xlu0 %v111_v14, %s2606_s0  ;;  %v2079_v18 = vpack.c.bf16 %v424_v16, %v422_v15  ;;  %v322_v15 = vld [vmem:[#allocation2 + $0x140] sm:$0xff]  ;;  %v1752_v16 = vld [vmem:[%s2870_s1 + $0x68] sm:$0xff] }
 0x164   :  { %v114_v20 = vpop.permute.xlu0 %113 }
 0x165   :  { %v116_v21 = vmax.f32 %v111_v14, %v114_v20  ;;  %v419_v14 = vld [vmem:[#allocation2 + $0x400] sm:$0xff] }
 0x166   :  { %v2077_v17 = vpack.c.bf16 %v419_v14, %v417_v13  ;;  %v423_v20 = vld [vmem:[#allocation2 + $0x420] sm:$0xff]  ;;  %v2115_v13 = vpack.c.bf16 %v323_v10, %v321_v9  ;;  %v320_v14 = vld [vmem:[#allocation2 + $0x130] sm:$0xff]  ;;  %v353_v10 = vld [vmem:[#allocation2 + $0x238] sm:$0xff] }
 0x167   :  { %118 = vrot.lane.b32.xlu0 %v116_v21, %s2607_s27  ;;  %v426_v21 = vld [vmem:[#allocation2 + $0x438] sm:$0xff]  ;;  %v2081_v23 = vpack.c.bf16 %v423_v20, %v421_v19  ;;  %v2117_v19 = vpack.c.bf16 %v322_v15, %v320_v14  ;;  %v1751_v20 = vld [vmem:[%s2870_s1 + $0x60] sm:$0xff]  ;;  %v352_v14 = vld [vmem:[#allocation2 + $0x230] sm:$0xff] }
 0x168   :  { %v2083_v24 = vpack.c.bf16 %v428_v22, %v426_v21  ;;  %v324_v22 = vld [vmem:[#allocation2 + $0x150] sm:$0xff]  ;;  %v350_v9 = vld [vmem:[#allocation2 + $0x220] sm:$0xff] }
 0x169   :  { %v354_v15 = vld [vmem:[#allocation2 + $0x240] sm:$0xff] }
 0x1d9   :  { %v119_v26 = vpop.permute.xlu0 %118 }
 0x1da   :  { %v122_v27 = vsel %vm121_vm3, 0.0, %v119_v26  ;;  %v427_v26 = vld [vmem:[#allocation2 + $0x440] sm:$0xff]  ;;  %vm1563_vm3 = vcmask 490496  }
 0x1db   :  { %v124_v29 = vsel %vm123_vm4, %v122_v27, 0.0  ;;  %v430_v27 = vld [vmem:[#allocation2 + $0x458] sm:$0xff]  ;;  %vm1647_vm4 = vcmask 244736  }
 0x1dc   :  { %v126_v34 = vsel %vm125_vm5, %v124_v29, 1.0  ;;  %v2085_v29 = vpack.c.bf16 %v427_v26, %v425_v25  ;;  %v329_v25 = vld [vmem:[#allocation2 + $0x178] sm:$0xff]  ;;  %v331_v26 = vld [vmem:[#allocation2 + $0x188] sm:$0xff]  ;;  %vm1725_vm5 = vcmask 27648  }
 0x1dd   :  { %1878 = vmatmul.mubr.msk.f32.vlgmr.msra.gmra.mrb[0].mxu1 %vm132_vm6, %v126_v34  ;;  %v436_v34 = vld [vmem:[#allocation2 + $0x488] sm:$0xff] }
 0x1de   :  { %2046 = vmatpush1.bf16.msra.mxu1 %v2045_v28  ;;  %513 = vmatprep.mubr.f32.mxu1 %v1748_v33  ;;  %v432_v28 = vld [vmem:[#allocation2 + $0x468] sm:$0xff]  ;;  %v434_v33 = vld [vmem:[#allocation2 + $0x478] sm:$0xff] }
 0x1df   :  { %2048 = vmatprep.subr.bf16.mxu1 %v2047_v30  ;;  %v2087_v30 = vpack.c.bf16 %v432_v28, %v430_v27  ;;  %v2091_v36 = vpack.c.bf16 %v436_v34, %v434_v33  ;;  %v1753_v28 = vld [vmem:[%s2870_s1 + $0x70] sm:$0xff]  ;;  %v333_v33 = vld [vmem:[#allocation2 + $0x198] sm:$0xff]  ;;  %v335_v34 = vld [vmem:[#allocation2 + $0x1a8] sm:$0xff] }
 0x1e2   :  { %2050 = vmatpush1.bf16.msra.mxu1 %v2049_v37  ;;  %v433_v37 = vld [vmem:[#allocation2 + $0x470] sm:$0xff] }
 0x1e3   :  { %2052 = vmatprep.subr.bf16.mxu1 %v2051_v38  ;;  %v435_v38 = vld [vmem:[#allocation2 + $0x480] sm:$0xff] }
 0x1e4   :  { %v2093_v41 = vpack.c.bf16 %v435_v38, %v433_v37  ;;  %v332_v37 = vld [vmem:[#allocation2 + $0x190] sm:$0xff]  ;;  %v334_v38 = vld [vmem:[#allocation2 + $0x1a0] sm:$0xff] }
 0x1e6   :  { %2054 = vmatpush1.bf16.msra.mxu1 %v2053_v43  ;;  %v437_v43 = vld [vmem:[#allocation2 + $0x490] sm:$0xff] }
 0x1e7   :  { %2056 = vmatprep.subr.bf16.mxu1 %v2055_v44  ;;  %v439_v44 = vld [vmem:[#allocation2 + $0x4a0] sm:$0xff] }
 0x1e8   :  { %v2097_v47 = vpack.c.bf16 %v439_v44, %v437_v43  ;;  %v336_v43 = vld [vmem:[#allocation2 + $0x1b0] sm:$0xff]  ;;  %v338_v44 = vld [vmem:[#allocation2 + $0x1c0] sm:$0xff] }
 0x1ea   :  { %2058 = vmatpush1.bf16.msra.mxu1 %v2057_v49  ;;  %v441_v49 = vld [vmem:[#allocation2 + $0x4b0] sm:$0xff] }
 0x1eb   :  { %2060 = vmatprep.subr.bf16.mxu1 %v2059_v50  ;;  %v443_v50 = vld [vmem:[#allocation2 + $0x4c0] sm:$0xff] }
 0x1ec   :  { %v2101_v53 = vpack.c.bf16 %v443_v50, %v441_v49  ;;  %v342_v49 = vld [vmem:[#allocation2 + $0x1e0] sm:$0xff]  ;;  %v2135_v50 = vpack.c.bf16 %v343_v46, %v341_v45  ;;  %v637_v46 = vld [vmem:[#allocation2 + $0x4f8] sm:$0xff] }
 0x1ed   :  { %v374_v45 = vld [vmem:[#allocation2 + $0x2e0] sm:$0xff] }
 0x1ee   :  { %2062 = vmatpush1.bf16.msra.mxu1 %v2061_v55  ;;  %v445_v55 = vld [vmem:[#allocation2 + $0x4d0] sm:$0xff] }
 0x1ef   :  { %2064 = vmatprep.subr.bf16.mxu1 %v2063_v56  ;;  %v447_v56 = vld [vmem:[#allocation2 + $0x4e0] sm:$0xff] }
 0x1f0   :  { %v2105_v59 = vpack.c.bf16 %v447_v56, %v445_v55  ;;  %v347_v55 = vld [vmem:[#allocation2 + $0x208] sm:$0xff]  ;;  %v2034_v56 = vpack.c.bf16 %v213_v52, %v212_v51  ;;  %v638_v51 = vld [vmem:[#allocation2 + $0x500] sm:$0xff]  ;;  %v641_v52 = vld [vmem:[#allocation2 + $0x518] sm:$0xff] }
 0x1f2   :  { %2066 = vmatpush1.bf16.msra.mxu1 %v2065_v61  ;;  %v312_v61 = vld [vmem:[#allocation2 + $0xf0] sm:$0xff]  ;;  %2035 = vmatpush3.bf16.msra.mxu0 %v2034_v56 }
 0x1f3   :  { %2068 = vmatprep.subr.bf16.mxu1 %v2067_v62  ;;  %v314_v62 = vld [vmem:[#allocation2 + $0x100] sm:$0xff]  ;;  %2036 = vmatprep.subr.bf16.mxu0 %v2603_v0 }
 0x1f4   :  { %v2109_v4 = vpack.c.bf16 %v314_v62, %v312_v61  ;;  %v346_v62 = vld [vmem:[#allocation2 + $0x200] sm:$0xff] }
 0x1f6   :  { %2070 = vmatpush1.bf16.msra.mxu1 %v2069_v5  ;;  %v2111_v5 = vpack.c.bf16 %v319_v2, %v317_v63  ;;  %v216_v63 = vld [vmem:[#allocation2 + $0xc0] sm:$0xff]  ;;  %v217_v2 = vld [vmem:[#allocation2 + $0xd0] sm:$0x1f] }
 0x1f7   :  { %2072 = vmatprep.subr.bf16.mxu1 %v2071_v6  ;;  %v316_v6 = vld [vmem:[#allocation2 + $0x110] sm:$0xff] }
 0x1fa   :  { %2074 = vmatpush1.bf16.msra.mxu1 %v2073_v11  ;;  %v2113_v11 = vpack.c.bf16 %v318_v7, %v316_v6  ;;  %v2040_v6 = vpack.c.bf16 %v217_v2, %v216_v63  ;;  %v306_v63 = vld [vmem:[%s2870_s1 + $0x10] sm:$0xff] }
 0x1fb   :  { %2076 = vmatprep.subr.bf16.mxu1 %v2075_v12  ;;  %v1749_v12 = vld [vmem:[%s2870_s1 + $0x50] sm:$0xff] }
 0x1fe   :  { %2078 = vmatpush1.bf16.msra.mxu1 %v2077_v17  ;;  %v325_v17 = vld [vmem:[#allocation2 + $0x158] sm:$0xff] }
 0x1ff   :  { %2080 = vmatprep.subr.bf16.mxu1 %v2079_v18  ;;  %v327_v18 = vld [vmem:[#allocation2 + $0x168] sm:$0xff] }
 0x200   :  { %v2119_v21 = vpack.c.bf16 %v327_v18, %v325_v17  ;;  %v359_v17 = vld [vmem:[#allocation2 + $0x268] sm:$0xff]  ;;  %v2149_v18 = vpack.c.bf16 %v354_v15, %v352_v14  ;;  %v653_v14 = vld [vmem:[#allocation2 + $0x578] sm:$0xff] }
 0x201   :  { %v655_v15 = vld [vmem:[#allocation2 + $0x588] sm:$0xff] }
 0x202   :  { %2082 = vmatpush1.bf16.msra.mxu1 %v2081_v23  ;;  %v326_v23 = vld [vmem:[#allocation2 + $0x160] sm:$0xff] }
 0x203   :  { %2084 = vmatprep.subr.bf16.mxu1 %v2083_v24  ;;  %v1754_v24 = vld [vmem:[%s2870_s1 + $0x78] sm:$0xff]  ;;  %v2121_v27 = vpack.c.bf16 %v326_v23, %v324_v22  ;;  %v363_v23 = vld [vmem:[#allocation2 + $0x288] sm:$0xff] }
 0x204   :  { %v361_v22 = vld [vmem:[#allocation2 + $0x278] sm:$0xff] }
 0x206   :  { %2086 = vmatpush1.bf16.msra.mxu1 %v2085_v29  ;;  %v2123_v29 = vpack.c.bf16 %v331_v26, %v329_v25  ;;  %v2155_v25 = vpack.c.bf16 %v363_v23, %v361_v22  ;;  %v360_v26 = vld [vmem:[#allocation2 + $0x270] sm:$0xff]  ;;  %v657_v22 = vld [vmem:[#allocation2 + $0x598] sm:$0xff]  ;;  %v659_v23 = vld [vmem:[#allocation2 + $0x5a8] sm:$0xff] }
 0x207   :  { %2088 = vmatprep.subr.bf16.mxu1 %v2087_v30  ;;  %v328_v30 = vld [vmem:[#allocation2 + $0x170] sm:$0xff] }
 0x20a   :  { %2090 = vmatpush1.bf16.msra.mxu1 %v2089_v35  ;;  %v2125_v35 = vpack.c.bf16 %v330_v31, %v328_v30 }
 0x20b   :  { %2092 = vmatprep.subr.bf16.mxu1 %v2091_v36  ;;  %v2127_v36 = vpack.c.bf16 %v335_v34, %v333_v33  ;;  %v366_v33 = vld [vmem:[#allocation2 + $0x2a0] sm:$0xff]  ;;  %v369_v34 = vld [vmem:[#allocation2 + $0x2b8] sm:$0xff] }
 0x20e   :  { %2094 = vmatpush1.bf16.msra.mxu1 %v2093_v41  ;;  %v2129_v41 = vpack.c.bf16 %v334_v38, %v332_v37  ;;  %v368_v38 = vld [vmem:[#allocation2 + $0x2b0] sm:$0xff] }
 0x20f   :  { %2096 = vmatprep.subr.bf16.mxu1 %v2095_v42  ;;  %v2131_v42 = vpack.c.bf16 %v339_v40, %v337_v39  ;;  %v370_v39 = vld [vmem:[#allocation2 + $0x2c0] sm:$0xff]  ;;  %v373_v40 = vld [vmem:[#allocation2 + $0x2d8] sm:$0xff] }
 0x212   :  { %2098 = vmatpush1.bf16.msra.mxu1 %v2097_v47  ;;  %v2133_v47 = vpack.c.bf16 %v338_v44, %v336_v43  ;;  %v372_v44 = vld [vmem:[#allocation2 + $0x2d0] sm:$0xff] }
 0x213   :  { %2100 = vmatprep.subr.bf16.mxu1 %v2099_v48  ;;  %v340_v48 = vld [vmem:[#allocation2 + $0x1d0] sm:$0xff] }
 0x214   :  { %v2137_v58 = vpack.c.bf16 %v342_v49, %v340_v48  ;;  %v2169_v48 = vpack.c.bf16 %v374_v45, %v372_v44  ;;  %v668_v44 = vld [vmem:[#allocation2 + $0x5f0] sm:$0xff]  ;;  %v670_v45 = vld [vmem:[#allocation2 + $0x600] sm:$0xff] }
 0x216   :  { %2102 = vmatpush1.bf16.msra.mxu1 %v2101_v53  ;;  %v214_v53 = vld [vmem:[#allocation2 + $0xa0] sm:$0xff] }
 0x217   :  { %2104 = vmatprep.subr.bf16.mxu1 %v2103_v54  ;;  %v345_v54 = vld [vmem:[#allocation2 + $0x1f8] sm:$0xff] }
 0x218   :  { %v2139_v61 = vpack.c.bf16 %v347_v55, %v345_v54  ;;  %v304_v54 = vld [vmem:[%s2870_s1] sm:$0xff] }
 0x21a   :  { %2106 = vmatpush1.bf16.msra.mxu1 %v2105_v59  ;;  %v344_v59 = vld [vmem:[#allocation2 + $0x1f0] sm:$0xff] }
 0x21b   :  { %2108 = vmatprep.subr.bf16.mxu1 %v2107_v60  ;;  %v2037_v60 = vpack.c.bf16 %v215_v57, %v214_v53  ;;  %v643_v53 = vld [vmem:[#allocation2 + $0x528] sm:$0xff]  ;;  %v640_v57 = vld [vmem:[#allocation2 + $0x510] sm:$0xff] }
 0x21c   :  { %v2175_v56 = vpack.c.bf16 %v643_v53, %v641_v52  ;;  %v677_v52 = vld [vmem:[#allocation2 + $0x638] sm:$0xff]  ;;  %v679_v53 = vld [vmem:[#allocation2 + $0x648] sm:$0xff] }
 0x21d   :  { %514 = vmatmul.mubr.f32.vlgmr.msra.gmra.mrb[2].mxu1 %v1747_v3  ;;  %v349_v3 = vld [vmem:[#allocation2 + $0x218] sm:$0xff]  ;;  %2038 = vmatpush3.bf16.msra.mxu0 %v2037_v60 }
 0x21e   :  { %2110 = vmatpush1.bf16.msra.mxu1 %v2109_v4  ;;  %519 = vmatprep.mubr.f32.mxu1 %v1750_v8  ;;  %v351_v4 = vld [vmem:[#allocation2 + $0x228] sm:$0xff]  ;;  %v348_v8 = vld [vmem:[#allocation2 + $0x210] sm:$0xff]  ;;  %v645_v60 = vld [vmem:[#allocation2 + $0x538] sm:$0xff] }
 0x21f   :  { %2112 = vmatprep.subr.bf16.mxu1 %v2111_v5  ;;  %v2141_v5 = vpack.c.bf16 %v346_v62, %v344_v59  ;;  %v2143_v7 = vpack.c.bf16 %v351_v4, %v349_v3  ;;  %2039 = vmatprep.subr.bf16.mxu0 %v2603_v0  ;;  %v307_v59 = vld [vmem:[%s2870_s1 + $0x18] sm:$0xff]  ;;  %v644_v3 = vld [vmem:[#allocation2 + $0x530] sm:$0xff]  ;;  %v646_v4 = vld [vmem:[#allocation2 + $0x540] sm:$0xff] }
 0x221   :  { %520 = vmatmul.mubr.f32.gmra.mrb[4].mxu1 %v1749_v12  ;;  %v2145_v12 = vpack.c.bf16 %v350_v9, %v348_v8  ;;  %2042 = vmatpush3.bf16.msk.msra.mxu0 %vm2041_vm8, %v2040_v6  ;;  %v649_v6 = vld [vmem:[#allocation2 + $0x558] sm:$0xff]  ;;  %v2181_v8 = vpack.c.bf16 %v646_v4, %v644_v3  ;;  %v308_v9 = vld [vmem:[%s2870_s1 + $0x20] sm:$0xff]  ;;  %v687_v3 = vld [vmem:[#allocation2 + $0x688] sm:$0xff] }
 0x222   :  { %2114 = vmatpush1.bf16.msra.mxu1 %v2113_v11  ;;  %525 = vmatprep.mubr.f32.mxu1 %v1752_v16  ;;  %v355_v11 = vld [vmem:[#allocation2 + $0x248] sm:$0xff]  ;;  %v357_v16 = vld [vmem:[#allocation2 + $0x258] sm:$0xff] }
 0x223   :  { %2116 = vmatprep.subr.bf16.mxu1 %v2115_v13  ;;  %v2147_v13 = vpack.c.bf16 %v355_v11, %v353_v10  ;;  %v648_v11 = vld [vmem:[#allocation2 + $0x550] sm:$0xff] }
 0x225   :  { %526 = vmatmul.mubr.f32.gmra.mrb[6].mxu1 %v1751_v20  ;;  %v356_v20 = vld [vmem:[#allocation2 + $0x250] sm:$0xff] }
 0x226   :  { %2118 = vmatpush1.bf16.msra.mxu1 %v2117_v19  ;;  %531 = vmatprep.mubr.f32.mxu1 %v1754_v24  ;;  %v2151_v19 = vpack.c.bf16 %v359_v17, %v357_v16  ;;  %v310_v17 = vld [vmem:[%s2870_s1 + $0x30] sm:$0xff] }
 0x227   :  { %2120 = vmatprep.subr.bf16.mxu1 %v2119_v21  ;;  %v358_v21 = vld [vmem:[#allocation2 + $0x260] sm:$0xff] }
 0x228   :  { %v2153_v24 = vpack.c.bf16 %v358_v21, %v356_v20  ;;  %v654_v20 = vld [vmem:[#allocation2 + $0x580] sm:$0xff]  ;;  %v1756_v21 = vld [vmem:[%s2870_s1 + $0x88] sm:$0xff] }
 0x229   :  { %532 = vmatmul.mubr.f32.gmra.mrb[8].mxu1 %v1753_v28  ;;  %v365_v28 = vld [vmem:[#allocation2 + $0x298] sm:$0xff] }
 0x22a   :  { %2122 = vmatpush1.bf16.msra.mxu1 %v2121_v27  ;;  %602 = vmatprep.mubr.f32.mxu1 %v305_v32  ;;  %v362_v27 = vld [vmem:[#allocation2 + $0x280] sm:$0xff]  ;;  %v364_v32 = vld [vmem:[#allocation2 + $0x290] sm:$0xff] }
 0x22b   :  { %2124 = vmatprep.subr.bf16.mxu1 %v2123_v29  ;;  %v367_v29 = vld [vmem:[#allocation2 + $0x2a8] sm:$0xff]  ;;  %v2157_v30 = vpack.c.bf16 %v362_v27, %v360_v26  ;;  %v656_v26 = vld [vmem:[#allocation2 + $0x590] sm:$0xff]  ;;  %v658_v27 = vld [vmem:[#allocation2 + $0x5a0] sm:$0xff] }
 0x22c   :  { %v2159_v31 = vpack.c.bf16 %v367_v29, %v365_v28  ;;  %v661_v28 = vld [vmem:[#allocation2 + $0x5b8] sm:$0xff]  ;;  %v663_v29 = vld [vmem:[#allocation2 + $0x5c8] sm:$0xff] }
 0x22e   :  { %2126 = vmatpush1.bf16.msra.mxu1 %v2125_v35  ;;  %v371_v35 = vld [vmem:[#allocation2 + $0x2c8] sm:$0xff] }
 0x22f   :  { %2128 = vmatprep.subr.bf16.mxu1 %v2127_v36  ;;  %v2161_v36 = vpack.c.bf16 %v366_v33, %v364_v32  ;;  %v2163_v37 = vpack.c.bf16 %v371_v35, %v369_v34  ;;  %v660_v32 = vld [vmem:[#allocation2 + $0x5b0] sm:$0xff]  ;;  %v662_v33 = vld [vmem:[#allocation2 + $0x5c0] sm:$0xff]  ;;  %v665_v34 = vld [vmem:[#allocation2 + $0x5d8] sm:$0xff] }
 0x230   :  { %v667_v35 = vld [vmem:[#allocation2 + $0x5e8] sm:$0xff] }
 0x232   :  { %2130 = vmatpush1.bf16.msra.mxu1 %v2129_v41  ;;  %v375_v41 = vld [vmem:[#allocation2 + $0x2e8] sm:$0xff] }
 0x233   :  { %2132 = vmatprep.subr.bf16.mxu1 %v2131_v42  ;;  %v2165_v42 = vpack.c.bf16 %v370_v39, %v368_v38  ;;  %v2167_v43 = vpack.c.bf16 %v375_v41, %v373_v40  ;;  %v664_v38 = vld [vmem:[#allocation2 + $0x5d0] sm:$0xff]  ;;  %v666_v39 = vld [vmem:[#allocation2 + $0x5e0] sm:$0xff]  ;;  %v669_v40 = vld [vmem:[#allocation2 + $0x5f8] sm:$0xff] }
 0x234   :  { %v671_v41 = vld [vmem:[#allocation2 + $0x608] sm:$0xff] }
 0x236   :  { %2134 = vmatpush1.bf16.msra.mxu1 %v2133_v47  ;;  %v639_v47 = vld [vmem:[#allocation2 + $0x508] sm:$0xff] }
 0x237   :  { %2136 = vmatprep.subr.bf16.mxu1 %v2135_v50  ;;  %v2171_v49 = vpack.c.bf16 %v639_v47, %v637_v46  ;;  %v636_v50 = vld [vmem:[#allocation2 + $0x4f0] sm:$0xff]  ;;  %v673_v46 = vld [vmem:[#allocation2 + $0x618] sm:$0xff]  ;;  %v675_v47 = vld [vmem:[#allocation2 + $0x628] sm:$0xff] }
 0x238   :  { %v2173_v55 = vpack.c.bf16 %v638_v51, %v636_v50  ;;  %v672_v50 = vld [vmem:[#allocation2 + $0x610] sm:$0xff]  ;;  %v674_v51 = vld [vmem:[#allocation2 + $0x620] sm:$0xff] }
 0x23a   :  { %2138 = vmatpush1.bf16.msra.mxu1 %v2137_v58  ;;  %v642_v58 = vld [vmem:[#allocation2 + $0x520] sm:$0xff] }
 0x23b   :  { %2140 = vmatprep.subr.bf16.mxu1 %v2139_v61  ;;  %v647_v61 = vld [vmem:[#allocation2 + $0x548] sm:$0xff]  ;;  %v2177_v62 = vpack.c.bf16 %v642_v58, %v640_v57  ;;  %v678_v57 = vld [vmem:[#allocation2 + $0x640] sm:$0xff]  ;;  %v681_v58 = vld [vmem:[#allocation2 + $0x658] sm:$0xff] }
 0x23c   :  { %v2179_v2 = vpack.c.bf16 %v647_v61, %v645_v60 }
 0x23e   :  { %2142 = vmatpush1.bf16.msra.mxu1 %v2141_v5  ;;  %v309_v5 = vld [vmem:[%s2870_s1 + $0x28] sm:$0xff] }
 0x23f   :  { %2144 = vmatprep.subr.bf16.mxu1 %v2143_v7  ;;  %v651_v7 = vld [vmem:[#allocation2 + $0x568] sm:$0xff] }
 0x240   :  { %v2183_v10 = vpack.c.bf16 %v651_v7, %v649_v6  ;;  %v684_v6 = vld [vmem:[#allocation2 + $0x670] sm:$0xff]  ;;  %v686_v7 = vld [vmem:[#allocation2 + $0x680] sm:$0xff] }
 0x242   :  { %2146 = vmatpush1.bf16.msra.mxu1 %v2145_v12  ;;  %v650_v12 = vld [vmem:[#allocation2 + $0x560] sm:$0xff] }
 0x243   :  { %2148 = vmatprep.subr.bf16.mxu1 %v2147_v13  ;;  %v311_v13 = vld [vmem:[%s2870_s1 + $0x38] sm:$0xff]  ;;  %v2185_v16 = vpack.c.bf16 %v650_v12, %v648_v11  ;;  %v688_v12 = vld [vmem:[#allocation2 + $0x690] sm:$0xff] }
 0x246   :  { %2150 = vmatpush1.bf16.msra.mxu1 %v2149_v18  ;;  %v2187_v18 = vpack.c.bf16 %v655_v15, %v653_v14  ;;  %v693_v14 = vld [vmem:[#allocation2 + $0x6b8] sm:$0xff]  ;;  %v695_v15 = vld [vmem:[#allocation2 + $0x6c8] sm:$0xff] }
 0x247   :  { %2152 = vmatprep.subr.bf16.mxu1 %v2151_v19  ;;  %v652_v19 = vld [vmem:[#allocation2 + $0x570] sm:$0xff] }
 0x24a   :  { %2154 = vmatpush1.bf16.msra.mxu1 %v2153_v24  ;;  %v2189_v24 = vpack.c.bf16 %v654_v20, %v652_v19  ;;  %v694_v19 = vld [vmem:[#allocation2 + $0x6c0] sm:$0xff]  ;;  %v697_v20 = vld [vmem:[#allocation2 + $0x6d8] sm:$0xff] }
 0x24b   :  { %2156 = vmatprep.subr.bf16.mxu1 %v2155_v25  ;;  %v2191_v25 = vpack.c.bf16 %v659_v23, %v657_v22 }
 0x24e   :  { %2158 = vmatpush1.bf16.msra.mxu1 %v2157_v30  ;;  %v2193_v30 = vpack.c.bf16 %v658_v27, %v656_v26  ;;  %v1755_v27 = vld [vmem:[%s2870_s1 + $0x80] sm:$0xff] }
 0x24f   :  { %2160 = vmatprep.subr.bf16.mxu1 %v2159_v31  ;;  %v2195_v31 = vpack.c.bf16 %v663_v29, %v661_v28  ;;  %v1758_v28 = vld [vmem:[%s2870_s1 + $0x98] sm:$0xff]  ;;  %v1757_v29 = vld [vmem:[%s2870_s1 + $0x90] sm:$0xff] }
 0x252   :  { %2162 = vmatpush1.bf16.msra.mxu1 %v2161_v36  ;;  %v2197_v36 = vpack.c.bf16 %v662_v33, %v660_v32  ;;  %v1762_v32 = vld [vmem:[%s2870_s1 + $0xb8] sm:$0xff]  ;;  %v1761_v33 = vld [vmem:[%s2870_s1 + $0xb0] sm:$0xff] }
 0x253   :  { %2164 = vmatprep.subr.bf16.mxu1 %v2163_v37  ;;  %v2199_v37 = vpack.c.bf16 %v667_v35, %v665_v34 }
 0x256   :  { %2166 = vmatpush1.bf16.msra.mxu1 %v2165_v42  ;;  %v2201_v42 = vpack.c.bf16 %v666_v39, %v664_v38  ;;  %v918_v38 = vld [vmem:[#allocation2 + $0x908] sm:$0xff] }
 0x257   :  { %2168 = vmatprep.subr.bf16.mxu1 %v2167_v43  ;;  %v2203_v43 = vpack.c.bf16 %v671_v41, %v669_v40  ;;  %v915_v40 = vld [vmem:[#allocation2 + $0x8f0] sm:$0xff]  ;;  %v917_v41 = vld [vmem:[#allocation2 + $0x900] sm:$0xff] }
 0x25a   :  { %2170 = vmatpush1.bf16.msra.mxu1 %v2169_v48  ;;  %v2205_v48 = vpack.c.bf16 %v670_v45, %v668_v44  ;;  %v2237_v45 = vpack.c.bf16 %v917_v41, %v915_v40  ;;  %v955_v40 = vld [vmem:[#allocation2 + $0xa30] sm:$0xff]  ;;  %v957_v41 = vld [vmem:[#allocation2 + $0xa40] sm:$0xff] }
 0x25b   :  { %2172 = vmatprep.subr.bf16.mxu1 %v2171_v49  ;;  %v2207_v49 = vpack.c.bf16 %v675_v47, %v673_v46 }
 0x25d   :  { %603 = vmatmul.mubr.f32.vlgmr.msra.gmra.mrb[2].mxu1 %v304_v54  ;;  %v2209_v54 = vpack.c.bf16 %v674_v51, %v672_v50  ;;  %v924_v50 = vld [vmem:[#allocation2 + $0x938] sm:$0xff]  ;;  %v926_v51 = vld [vmem:[#allocation2 + $0x948] sm:$0xff] }
 0x25e   :  { %2174 = vmatpush1.bf16.msra.mxu1 %v2173_v55  ;;  %608 = vmatprep.mubr.f32.mxu1 %v307_v59  ;;  %v2211_v55 = vpack.c.bf16 %v679_v53, %v677_v52  ;;  %v683_v59 = vld [vmem:[#allocation2 + $0x668] sm:$0xff]  ;;  %v2243_v53 = vpack.c.bf16 %v926_v51, %v924_v50 }
 0x25f   :  { %2176 = vmatprep.subr.bf16.mxu1 %v2175_v56  ;;  %v676_v56 = vld [vmem:[#allocation2 + $0x630] sm:$0xff]  ;;  %v2215_v61 = vpack.c.bf16 %v683_v59, %v681_v58 }
 0x260   :  { %v2213_v60 = vpack.c.bf16 %v678_v57, %v676_v56  ;;  %v928_v56 = vld [vmem:[#allocation2 + $0x958] sm:$0xff]  ;;  %v930_v57 = vld [vmem:[#allocation2 + $0x968] sm:$0xff] }
 0x261   :  { %609 = vmatmul.mubr.f32.gmra.mrb[4].mxu1 %v306_v63  ;;  %v682_v63 = vld [vmem:[#allocation2 + $0x660] sm:$0xff]  ;;  %v2247_v59 = vpack.c.bf16 %v930_v57, %v928_v56 }
 0x262   :  { %2178 = vmatpush1.bf16.msra.mxu1 %v2177_v62  ;;  %614 = vmatprep.mubr.f32.mxu1 %v309_v5  ;;  %v680_v62 = vld [vmem:[#allocation2 + $0x650] sm:$0xff] }
 0x263   :  { %2180 = vmatprep.subr.bf16.mxu1 %v2179_v2  ;;  %v685_v2 = vld [vmem:[#allocation2 + $0x678] sm:$0xff]  ;;  %v2217_v4 = vpack.c.bf16 %v682_v63, %v680_v62  ;;  %v934_v63 = vld [vmem:[#allocation2 + $0x988] sm:$0xff] }
 0x264   :  { %v2219_v5 = vpack.c.bf16 %v687_v3, %v685_v2  ;;  %v932_v62 = vld [vmem:[#allocation2 + $0x978] sm:$0xff] }
 0x265   :  { %615 = vmatmul.mubr.f32.gmra.mrb[6].mxu1 %v308_v9  ;;  %v691_v9 = vld [vmem:[#allocation2 + $0x6a8] sm:$0xff]  ;;  %v2251_v3 = vpack.c.bf16 %v934_v63, %v932_v62 }
 0x266   :  { %2182 = vmatpush1.bf16.msra.mxu1 %v2181_v8  ;;  %620 = vmatprep.mubr.f32.mxu1 %v311_v13  ;;  %v689_v8 = vld [vmem:[#allocation2 + $0x698] sm:$0xff]  ;;  %v690_v13 = vld [vmem:[#allocation2 + $0x6a0] sm:$0xff] }
 0x267   :  { %2184 = vmatprep.subr.bf16.mxu1 %v2183_v10  ;;  %v2221_v10 = vpack.c.bf16 %v686_v7, %v684_v6  ;;  %v2223_v11 = vpack.c.bf16 %v691_v9, %v689_v8  ;;  %v936_v6 = vld [vmem:[#allocation2 + $0x998] sm:$0xff]  ;;  %v938_v7 = vld [vmem:[#allocation2 + $0x9a8] sm:$0xff] }
 0x268   :  { %v2255_v9 = vpack.c.bf16 %v938_v7, %v936_v6 }
 0x269   :  { %621 = vmatmul.mubr.f32.gmra.mrb[8].mxu1 %v310_v17  ;;  %v2227_v17 = vpack.c.bf16 %v695_v15, %v693_v14 }
 0x26a   :  { %2186 = vmatpush1.bf16.msra.mxu1 %v2185_v16  ;;  %764 = vmatprep.mubr.f32.mxu1 %v1756_v21  ;;  %v2225_v16 = vpack.c.bf16 %v690_v13, %v688_v12  ;;  %v699_v21 = vld [vmem:[#allocation2 + $0x6e8] sm:$0xff]  ;;  %v940_v12 = vld [vmem:[#allocation2 + $0x9b8] sm:$0xff] }
 0x26b   :  { %2188 = vmatprep.subr.bf16.mxu1 %v2187_v18  ;;  %v692_v18 = vld [vmem:[#allocation2 + $0x6b0] sm:$0xff]  ;;  %v2231_v23 = vpack.c.bf16 %v699_v21, %v697_v20  ;;  %v942_v13 = vld [vmem:[#allocation2 + $0x9c8] sm:$0xff] }
 0x26c   :  { %v2229_v22 = vpack.c.bf16 %v694_v19, %v692_v18  ;;  %v2259_v15 = vpack.c.bf16 %v942_v13, %v940_v12  ;;  %v944_v18 = vld [vmem:[#allocation2 + $0x9d8] sm:$0xff]  ;;  %v946_v19 = vld [vmem:[#allocation2 + $0x9e8] sm:$0xff] }
 0x26d   :  { %v2263_v21 = vpack.c.bf16 %v946_v19, %v944_v18  ;;  %v852_v13 = vld [vmem:[#allocation2 + $0x6f8] sm:$0xff] }
 0x26e   :  { %2190 = vmatpush1.bf16.msra.mxu1 %v2189_v24  ;;  %v696_v24 = vld [vmem:[#allocation2 + $0x6d0] sm:$0xff] }
 0x26f   :  { %2192 = vmatprep.subr.bf16.mxu1 %v2191_v25  ;;  %v698_v25 = vld [vmem:[#allocation2 + $0x6e0] sm:$0xff] }
 0x270   :  { %v2233_v26 = vpack.c.bf16 %v698_v25, %v696_v24  ;;  %v948_v24 = vld [vmem:[#allocation2 + $0x9f8] sm:$0xff]  ;;  %v950_v25 = vld [vmem:[#allocation2 + $0xa08] sm:$0xff] }
 0x272   :  { %2194 = vmatpush1.bf16.msra.mxu1 %v2193_v30  ;;  %v1760_v30 = vld [vmem:[%s2870_s1 + $0xa8] sm:$0xff] }
 0x273   :  { %2196 = vmatprep.subr.bf16.mxu1 %v2195_v31  ;;  %v1759_v31 = vld [vmem:[%s2870_s1 + $0xa0] sm:$0xff]  ;;  %s2610_s1 = smov 32  }
 0x276   :  { %2198 = vmatpush1.bf16.msra.mxu1 %v2197_v36 }
 0x277   :  { %2200 = vmatprep.subr.bf16.mxu1 %v2199_v37  ;;  %v916_v37 = vld [vmem:[#allocation2 + $0x8f8] sm:$0xff] }
 0x278   :  { %v2235_v39 = vpack.c.bf16 %v918_v38, %v916_v37  ;;  %v958_v37 = vld [vmem:[#allocation2 + $0xa48] sm:$0xff] }
 0x27a   :  { %2202 = vmatpush1.bf16.msra.mxu1 %v2201_v42  ;;  %2236 = vmatprep.subr.bf16.mxu0 %v2235_v39  ;;  %v920_v42 = vld [vmem:[#allocation2 + $0x918] sm:$0xff] }
 0x27b   :  { %2204 = vmatprep.subr.bf16.mxu1 %v2203_v43  ;;  %v922_v43 = vld [vmem:[#allocation2 + $0x928] sm:$0xff] }
 0x27c   :  { %v2239_v47 = vpack.c.bf16 %v922_v43, %v920_v42  ;;  %v960_v42 = vld [vmem:[#allocation2 + $0xa58] sm:$0xff]  ;;  %v962_v43 = vld [vmem:[#allocation2 + $0xa68] sm:$0xff] }
 0x27e   :  { %2206 = vmatpush1.bf16.msra.mxu1 %v2205_v48  ;;  %v919_v48 = vld [vmem:[#allocation2 + $0x910] sm:$0xff] }
 0x27f   :  { %2208 = vmatprep.subr.bf16.mxu1 %v2207_v49  ;;  %v921_v49 = vld [vmem:[#allocation2 + $0x920] sm:$0xff] }
 0x280   :  { %v2241_v52 = vpack.c.bf16 %v921_v49, %v919_v48  ;;  %v964_v48 = vld [vmem:[#allocation2 + $0xa78] sm:$0xff]  ;;  %v966_v49 = vld [vmem:[#allocation2 + $0xa88] sm:$0xff] }
 0x281   :  { %v2283_v51 = vpack.c.bf16 %v966_v49, %v964_v48  ;;  %v860_v48 = vld [vmem:[#allocation2 + $0x738] sm:$0xff]  ;;  %v862_v49 = vld [vmem:[#allocation2 + $0x748] sm:$0xff] }
 0x282   :  { %2210 = vmatpush1.bf16.msra.mxu1 %v2209_v54  ;;  %v923_v54 = vld [vmem:[#allocation2 + $0x930] sm:$0xff] }
 0x283   :  { %2212 = vmatprep.subr.bf16.mxu1 %v2211_v55  ;;  %v925_v55 = vld [vmem:[#allocation2 + $0x940] sm:$0xff] }
 0x284   :  { %v2245_v58 = vpack.c.bf16 %v925_v55, %v923_v54  ;;  %v968_v54 = vld [vmem:[#allocation2 + $0xa98] sm:$0xff]  ;;  %v970_v55 = vld [vmem:[#allocation2 + $0xaa8] sm:$0xff] }
 0x285   :  { %v2287_v57 = vpack.c.bf16 %v970_v55, %v968_v54  ;;  %v1146_v55 = vld [vmem:[#allocation2 + $0xb58] sm:$0xff] }
 0x286   :  { %2214 = vmatpush1.bf16.msra.mxu1 %v2213_v60  ;;  %v927_v60 = vld [vmem:[#allocation2 + $0x950] sm:$0xff] }
 0x287   :  { %2216 = vmatprep.subr.bf16.mxu1 %v2215_v61  ;;  %v929_v61 = vld [vmem:[#allocation2 + $0x960] sm:$0xff] }
 0x288   :  { %v2249_v2 = vpack.c.bf16 %v929_v61, %v927_v60  ;;  %v972_v60 = vld [vmem:[#allocation2 + $0xab8] sm:$0xff]  ;;  %v974_v61 = vld [vmem:[#allocation2 + $0xac8] sm:$0xff] }
 0x289   :  { %v2291_v63 = vpack.c.bf16 %v974_v61, %v972_v60  ;;  %v218_v60 = vld [vmem:[#allocation2 + $0xe0] ss:$0 sm:$0xff]  ;;  %v864_v61 = vld [vmem:[#allocation2 + $0x758] sm:$0xff] }
 0x28a   :  { %2218 = vmatpush1.bf16.msra.mxu1 %v2217_v4  ;;  %v931_v4 = vld [vmem:[#allocation2 + $0x970] sm:$0xff] }
 0x28b   :  { %2220 = vmatprep.subr.bf16.mxu1 %v2219_v5  ;;  %v933_v5 = vld [vmem:[#allocation2 + $0x980] sm:$0xff] }
 0x28c   :  { %v2253_v8 = vpack.c.bf16 %v933_v5, %v931_v4  ;;  %v976_v4 = vld [vmem:[#allocation2 + $0xad8] sm:$0xff]  ;;  %v978_v5 = vld [vmem:[#allocation2 + $0xae8] sm:$0xff] }
 0x28d   :  { %v2295_v7 = vpack.c.bf16 %v978_v5, %v976_v4 }
 0x28e   :  { %2222 = vmatpush1.bf16.msra.mxu1 %v2221_v10  ;;  %v935_v10 = vld [vmem:[#allocation2 + $0x990] sm:$0xff] }
 0x28f   :  { %2224 = vmatprep.subr.bf16.mxu1 %v2223_v11  ;;  %v937_v11 = vld [vmem:[#allocation2 + $0x9a0] sm:$0xff] }
 0x290   :  { %v2257_v14 = vpack.c.bf16 %v937_v11, %v935_v10 }
 0x292   :  { %2226 = vmatpush1.bf16.msra.mxu1 %v2225_v16  ;;  %v939_v16 = vld [vmem:[#allocation2 + $0x9b0] sm:$0xff] }
 0x293   :  { %2228 = vmatprep.subr.bf16.mxu1 %v2227_v17  ;;  %v941_v17 = vld [vmem:[#allocation2 + $0x9c0] sm:$0xff] }
 0x294   :  { %v2261_v20 = vpack.c.bf16 %v941_v17, %v939_v16 }
 0x296   :  { %2230 = vmatpush1.bf16.msra.mxu1 %v2229_v22  ;;  %v943_v22 = vld [vmem:[#allocation2 + $0x9d0] sm:$0xff] }
 0x297   :  { %2232 = vmatprep.subr.bf16.mxu1 %v2231_v23  ;;  %v945_v23 = vld [vmem:[#allocation2 + $0x9e0] sm:$0xff] }
 0x29a   :  { %2234 = vmatpush1.bf16.msra.mxu1 %v2233_v26  ;;  %v2265_v26 = vpack.c.bf16 %v945_v23, %v943_v22 }
 0x29b   :  { %2427 = vmatprep.subr.bf16.mxu1 %v2603_v0 }
 0x29d   :  { %765 = vmatmul.mubr.f32.vlgmr.msra.gmra.mrb[2].mxu1 %v1755_v27  ;;  %v2267_v27 = vpack.c.bf16 %v950_v25, %v948_v24 }
 0x29e   :  { %770 = vmatprep.mubr.f32.mxu1 %v1758_v28  ;;  %v947_v28 = vld [vmem:[#allocation2 + $0x9f0] sm:$0xff] }
 0x2a1   :  { %771 = vmatmul.mubr.f32.gmra.mrb[4].mxu1 %v1757_v29  ;;  %v949_v29 = vld [vmem:[#allocation2 + $0xa00] sm:$0xff] }
 0x2a2   :  { %776 = vmatprep.mubr.f32.mxu1 %v1760_v30  ;;  %v952_v30 = vld [vmem:[#allocation2 + $0xa18] sm:$0xff] }
 0x2a5   :  { %777 = vmatmul.mubr.f32.gmra.mrb[6].mxu1 %v1759_v31  ;;  %v954_v31 = vld [vmem:[#allocation2 + $0xa28] sm:$0xff] }
 0x2a6   :  { %782 = vmatprep.mubr.f32.mxu1 %v1762_v32  ;;  %v2269_v32 = vpack.c.bf16 %v949_v29, %v947_v28 }
 0x2a9   :  { %783 = vmatmul.mubr.f32.gmra.mrb[8].mxu1 %v1761_v33  ;;  %v2271_v33 = vpack.c.bf16 %v954_v31, %v952_v30 }
 0x2aa   :  { %1927 = vmatprep.mubr.msk.f32.mxu1 %vm2604_vm0, %v2605_v1 }
 0x2b0   :  { %v202_v34 = vpop.f32.mrb[0].mxu1 }
 0x2b1   :  { %v206_v35 = vmax.f32 %v202_v34, 0.0  ;;  %v1879_v36 = vpop.f32.mrb[1].mxu1  ;;  %v951_v34 = vld [vmem:[#allocation2 + $0xa10] sm:$0xff] }
 0x2b2   :  { %v956_v36 = vld [vmem:[#allocation2 + $0xa38] sm:$0xff] }
 0x2b3   :  { %208 = vrot.lane.b32.xlu1 %v206_v35, %s2609_s20  ;;  %v2275_v39 = vpack.c.bf16 %v958_v37, %v956_v36  ;;  %v851_v36 = vld [vmem:[#allocation2 + $0x6f0] sm:$0xff]  ;;  %v853_v37 = vld [vmem:[#allocation2 + $0x700] sm:$0xff] }
 0x325   :  { %v209_v44 = vpop.permute.xlu1 %208 }
 0x326   :  { %v211_v46 = vmax.f32 %v206_v35, %v209_v44  ;;  %v953_v35 = vld [vmem:[#allocation2 + $0xa20] sm:$0xff]  ;;  %v2277_v44 = vpack.c.bf16 %v957_v41, %v955_v40 }
 0x327   :  { %v2273_v38 = vpack.c.bf16 %v953_v35, %v951_v34 }
 0x328   :  { %1893 = vmatmul.mubr.msk.f32.vlgmr.msra.gmra.mrb[2].mxu0 %vm219_vm9, %v211_v46  ;;  %v959_v46 = vld [vmem:[#allocation2 + $0xa50] sm:$0xff] }
 0x329   :  { %2238 = vmatpush1.bf16.msra.mxu0 %v2237_v45  ;;  %v2279_v45 = vpack.c.bf16 %v962_v43, %v960_v42  ;;  %v2301_v43 = vpack.c.bf16 %v853_v37, %v851_v36  ;;  %v890_v42 = vld [vmem:[#allocation2 + $0x828] sm:$0xff] }
 0x32a   :  { %2240 = vmatprep.subr.bf16.mxu0 %v2239_v47  ;;  %v961_v47 = vld [vmem:[#allocation2 + $0xa60] sm:$0xff] }
 0x32b   :  { %v2281_v50 = vpack.c.bf16 %v961_v47, %v959_v46  ;;  %v855_v46 = vld [vmem:[#allocation2 + $0x710] sm:$0xff]  ;;  %v857_v47 = vld [vmem:[#allocation2 + $0x720] sm:$0xff] }
 0x32d   :  { %2242 = vmatpush1.bf16.msra.mxu0 %v2241_v52  ;;  %v963_v52 = vld [vmem:[#allocation2 + $0xa70] sm:$0xff] }
 0x32e   :  { %2244 = vmatprep.subr.bf16.mxu0 %v2243_v53  ;;  %v965_v53 = vld [vmem:[#allocation2 + $0xa80] sm:$0xff] }
 0x32f   :  { %v2285_v56 = vpack.c.bf16 %v965_v53, %v963_v52  ;;  %v2305_v53 = vpack.c.bf16 %v857_v47, %v855_v46  ;;  %v889_v46 = vld [vmem:[#allocation2 + $0x820] sm:$0xff]  ;;  %v892_v47 = vld [vmem:[#allocation2 + $0x838] sm:$0xff] }
 0x331   :  { %2246 = vmatpush1.bf16.msra.mxu0 %v2245_v58  ;;  %v967_v58 = vld [vmem:[#allocation2 + $0xa90] sm:$0xff] }
 0x332   :  { %2248 = vmatprep.subr.bf16.mxu0 %v2247_v59  ;;  %v969_v59 = vld [vmem:[#allocation2 + $0xaa0] sm:$0xff] }
 0x333   :  { %v2289_v62 = vpack.c.bf16 %v969_v59, %v967_v58  ;;  %v861_v58 = vld [vmem:[#allocation2 + $0x740] sm:$0xff] }
 0x335   :  { %2250 = vmatpush1.bf16.msra.mxu0 %v2249_v2  ;;  %v971_v2 = vld [vmem:[#allocation2 + $0xab0] sm:$0xff] }
 0x336   :  { %2252 = vmatprep.subr.bf16.mxu0 %v2251_v3  ;;  %v973_v3 = vld [vmem:[#allocation2 + $0xac0] sm:$0xff] }
 0x337   :  { %v2293_v6 = vpack.c.bf16 %v973_v3, %v971_v2 }
 0x339   :  { %2254 = vmatpush1.bf16.msra.mxu0 %v2253_v8  ;;  %v975_v8 = vld [vmem:[#allocation2 + $0xad0] sm:$0xff] }
 0x33a   :  { %2256 = vmatprep.subr.bf16.mxu0 %v2255_v9  ;;  %v977_v9 = vld [vmem:[#allocation2 + $0xae0] sm:$0xff] }
 0x33b   :  { %v2297_v10 = vpack.c.bf16 %v977_v9, %v975_v8  ;;  %v868_v8 = vld [vmem:[#allocation2 + $0x778] sm:$0xff]  ;;  %v870_v9 = vld [vmem:[#allocation2 + $0x788] sm:$0xff] }
 0x33d   :  { %2258 = vmatpush1.bf16.msra.mxu0 %v2257_v14  ;;  %v854_v14 = vld [vmem:[#allocation2 + $0x708] sm:$0xff] }
 0x33e   :  { %2260 = vmatprep.subr.bf16.mxu0 %v2259_v15  ;;  %v2299_v15 = vpack.c.bf16 %v854_v14, %v852_v13  ;;  %v2315_v13 = vpack.c.bf16 %v870_v9, %v868_v8  ;;  %v867_v14 = vld [vmem:[#allocation2 + $0x770] sm:$0xff]  ;;  %v1311_v9 = vld [vmem:[#allocation2 + $0xe20] sm:$0xff] }
 0x33f   :  { %v1310_v8 = vld [vmem:[#allocation2 + $0xe10] sm:$0xff] }
 0x341   :  { %2262 = vmatpush1.bf16.msra.mxu0 %v2261_v20 }
 0x342   :  { %2264 = vmatprep.subr.bf16.mxu0 %v2263_v21 }
 0x345   :  { %2266 = vmatpush1.bf16.msra.mxu0 %v2265_v26 }
 0x346   :  { %2268 = vmatprep.subr.bf16.mxu0 %v2267_v27 }
 0x349   :  { %2270 = vmatpush1.bf16.msra.mxu0 %v2269_v32 }
 0x34a   :  { %2272 = vmatprep.subr.bf16.mxu0 %v2271_v33 }
 0x34d   :  { %2274 = vmatpush1.bf16.msra.mxu0 %v2273_v38  ;;  %v856_v38 = vld [vmem:[#allocation2 + $0x718] sm:$0xff] }
 0x34e   :  { %2276 = vmatprep.subr.bf16.mxu0 %v2275_v39  ;;  %v858_v39 = vld [vmem:[#allocation2 + $0x728] sm:$0xff] }
 0x351   :  { %2278 = vmatpush1.bf16.msra.mxu0 %v2277_v44 }
 0x352   :  { %2280 = vmatprep.subr.bf16.mxu0 %v2279_v45  ;;  %v2303_v45 = vpack.c.bf16 %v858_v39, %v856_v38  ;;  %v883_v38 = vld [vmem:[#allocation2 + $0x7f0] sm:$0xff]  ;;  %v885_v39 = vld [vmem:[#allocation2 + $0x800] sm:$0xff] }
 0x355   :  { %2282 = vmatpush1.bf16.msra.mxu0 %v2281_v50 }
 0x356   :  { %2284 = vmatprep.subr.bf16.mxu0 %v2283_v51 }
 0x359   :  { %2286 = vmatpush1.bf16.msra.mxu0 %v2285_v56  ;;  %v2307_v56 = vpack.c.bf16 %v862_v49, %v860_v48  ;;  %v894_v48 = vld [vmem:[#allocation2 + $0x848] sm:$0xff] }
 0x35a   :  { %2288 = vmatprep.subr.bf16.mxu0 %v2287_v57  ;;  %v859_v57 = vld [vmem:[#allocation2 + $0x730] sm:$0xff] }
 0x35b   :  { %v2309_v2 = vpack.c.bf16 %v861_v58, %v859_v57  ;;  %v896_v57 = vld [vmem:[#allocation2 + $0x858] sm:$0xff]  ;;  %v898_v58 = vld [vmem:[#allocation2 + $0x868] sm:$0xff] }
 0x35d   :  { %2290 = vmatpush1.bf16.msra.mxu0 %v2289_v62  ;;  %v866_v62 = vld [vmem:[#allocation2 + $0x768] sm:$0xff] }
 0x35e   :  { %2292 = vmatprep.subr.bf16.mxu0 %v2291_v63  ;;  %v2311_v5 = vpack.c.bf16 %v866_v62, %v864_v61  ;;  %v2343_v61 = vpack.c.bf16 %v898_v58, %v896_v57  ;;  %v895_v62 = vld [vmem:[#allocation2 + $0x850] sm:$0xff] }
 0x361   :  { %2294 = vmatpush1.bf16.msra.mxu0 %v2293_v6  ;;  %v863_v6 = vld [vmem:[#allocation2 + $0x750] sm:$0xff] }
 0x362   :  { %2296 = vmatprep.subr.bf16.mxu0 %v2295_v7  ;;  %v865_v7 = vld [vmem:[#allocation2 + $0x760] sm:$0xff] }
 0x365   :  { %2298 = vmatpush1.bf16.msra.mxu0 %v2297_v10 }
 0x366   :  { %2300 = vmatprep.subr.bf16.mxu0 %v2299_v15  ;;  %v869_v15 = vld [vmem:[#allocation2 + $0x780] sm:$0xff] }
 0x370   :  { %v766_v11 = vpop.f32.mrb[2].mxu1 }
 0x371   :  { %v768_v12 = vpop.f32.mrb[3].mxu1  ;;  %v797_v19 = vmax.f32 %v766_v11, 0.0  ;;  %v2313_v11 = vpack.c.bf16 %v865_v7, %v863_v6  ;;  %v1309_v6 = vld [vmem:[#allocation2 + $0xe00] sm:$0xff] }
 0x372   :  { %v798_v22 = vmax.f32 %v768_v12, 0.0 }
 0x374   :  { %v772_v16 = vpop.f32.mrb[4].mxu1 }
 0x375   :  { %v774_v17 = vpop.f32.mrb[5].mxu1  ;;  %v799_v27 = vmax.f32 %v772_v16, 0.0  ;;  %v872_v16 = vld [vmem:[#allocation2 + $0x798] sm:$0xff] }
 0x376   :  { %v800_v30 = vmax.f32 %v774_v17, 0.0  ;;  %v874_v17 = vld [vmem:[#allocation2 + $0x7a8] sm:$0xff] }
 0x378   :  { %v778_v18 = vpop.f32.mrb[6].mxu1 }
 0x379   :  { %v801_v20 = vmax.f32 %v778_v18, 0.0  ;;  %v780_v21 = vpop.f32.mrb[7].mxu1  ;;  %v2317_v18 = vpack.c.bf16 %v869_v15, %v867_v14  ;;  %v904_v14 = vld [vmem:[#allocation2 + $0x898] sm:$0xff]  ;;  %v2431_v15 = vpack.c.bf16 %v1311_v9, %v1310_v8  ;;  %v1143_v8 = vld [vmem:[#allocation2 + $0xb40] sm:$0xff] }
 0x37a   :  { %v802_v23 = vmax.f32 %v780_v21, 0.0  ;;  %v873_v21 = vld [vmem:[#allocation2 + $0x7a0] sm:$0xff] }
 0x37b   :  { %v805_v24 = vmax.f32 %v797_v19, %v801_v20  ;;  %v2319_v19 = vpack.c.bf16 %v874_v17, %v872_v16  ;;  %v871_v20 = vld [vmem:[#allocation2 + $0x790] sm:$0xff]  ;;  %v906_v16 = vld [vmem:[#allocation2 + $0x8a8] sm:$0xff] }
 0x37c   :  { %v806_v25 = vmax.f32 %v798_v22, %v802_v23  ;;  %v784_v26 = vpop.f32.mrb[8].mxu1  ;;  %v876_v22 = vld [vmem:[#allocation2 + $0x7b8] sm:$0xff]  ;;  %v878_v23 = vld [vmem:[#allocation2 + $0x7c8] sm:$0xff]  ;;  %v1312_v17 = vld [vmem:[#allocation2 + $0xe30] sm:$0xff] }
 0x37d   :  { %v803_v28 = vmax.f32 %v784_v26, 0.0  ;;  %v786_v29 = vpop.f32.mrb[9].mxu1  ;;  %v875_v26 = vld [vmem:[#allocation2 + $0x7b0] sm:$0xff] }
 0x37e   :  { %v804_v31 = vmax.f32 %v786_v29, 0.0  ;;  %v809_v32 = vmax.f32 %v805_v24, %v806_v25  ;;  %v2321_v24 = vpack.c.bf16 %v873_v21, %v871_v20  ;;  %v2323_v25 = vpack.c.bf16 %v878_v23, %v876_v22  ;;  %v882_v29 = vld [vmem:[#allocation2 + $0x7e8] sm:$0xff]  ;;  %v903_v21 = vld [vmem:[#allocation2 + $0x890] sm:$0xff]  ;;  %v905_v22 = vld [vmem:[#allocation2 + $0x8a0] sm:$0xff] }
 0x37f   :  { %v807_v33 = vmax.f32 %v799_v27, %v803_v28  ;;  %v877_v27 = vld [vmem:[#allocation2 + $0x7c0] sm:$0xff]  ;;  %v880_v28 = vld [vmem:[#allocation2 + $0x7d8] sm:$0xff]  ;;  %v2351_v20 = vpack.c.bf16 %v906_v16, %v904_v14  ;;  %v1152_v14 = vld [vmem:[#allocation2 + $0xb88] sm:$0xff] }
 0x380   :  { %v808_v34 = vmax.f32 %v800_v30, %v804_v31  ;;  %813 = vrot.lane.b32.xlu1 %v809_v32, %s2610_s1  ;;  %v2325_v30 = vpack.c.bf16 %v877_v27, %v875_v26  ;;  %v2327_v31 = vpack.c.bf16 %v882_v29, %v880_v28  ;;  %v879_v32 = vld [vmem:[#allocation2 + $0x7d0] sm:$0xff]  ;;  %v908_v23 = vld [vmem:[#allocation2 + $0x8b8] sm:$0xff]  ;;  %v1315_v27 = vld [vmem:[#allocation2 + $0xe60] sm:$0xff]  ;;  %v2353_v28 = vpack.c.bf16 %v905_v22, %v903_v21 }
 0x381   :  { %v1314_v26 = vld [vmem:[#allocation2 + $0xe50] sm:$0xff] }
 0x382   :  { %v810_v35 = vmax.f32 %v807_v33, %v808_v34  ;;  %v881_v33 = vld [vmem:[#allocation2 + $0x7e0] sm:$0xff]  ;;  %v884_v34 = vld [vmem:[#allocation2 + $0x7f8] sm:$0xff] }
 0x383   :  { %v2329_v36 = vpack.c.bf16 %v881_v33, %v879_v32  ;;  %v912_v32 = vld [vmem:[#allocation2 + $0x8d8] sm:$0xff]  ;;  %v2437_v33 = vpack.c.bf16 %v1315_v27, %v1314_v26  ;;  %v1160_v26 = vld [vmem:[#allocation2 + $0xbc8] sm:$0xff] }
 0x384   :  { %815 = vrot.lane.b32.xlu0 %v810_v35, %s2610_s1  ;;  %v886_v35 = vld [vmem:[#allocation2 + $0x808] sm:$0xff] }
 0x385   :  { %v2331_v37 = vpack.c.bf16 %v886_v35, %v884_v34  ;;  %v914_v34 = vld [vmem:[#allocation2 + $0x8e8] sm:$0xff]  ;;  %v1316_v35 = vld [vmem:[#allocation2 + $0xe70] sm:$0xff] }
 0x3f2   :  { %v2739_v40 = vpop.permute.xlu1 %813 }
 0x3f3   :  { %v822_v41 = vsel %vm819_vm10, %v2739_v40, 0.0 }
 0x3f4   :  { %v825_v44 = vsel %vm824_vm11, %v822_v41, 1.0  ;;  %v888_v41 = vld [vmem:[#allocation2 + $0x818] sm:$0xff] }
 0x3f5   :  { %1763 = vmatprep.mubr.msk.f32.mxu0 %vm827_vm12, %v825_v44  ;;  %v2751_v50 = vsel %vm827_vm12, %v825_v44, 0.0  ;;  %v2335_v44 = vpack.c.bf16 %v890_v42, %v888_v41  ;;  %v913_v41 = vld [vmem:[#allocation2 + $0x8e0] sm:$0xff] }
 0x3f6   :  { %1765 = vmatmul.mubr.msk.f32.vlgmr.msra.gmra.mrb[4].mxu0 %vm2744_vm13, %v2739_v40  ;;  %v2756_v51 = vpop.permute.xlu0 %815  ;;  %v836_v59 = vrot.slane %v2751_v50, 4 }
 0x3f7   :  { %2302 = vmatpush1.bf16.msra.mxu0 %v2301_v43  ;;  %v823_v52 = vsel %vm819_vm10, %v2756_v51, 0.0  ;;  %v2333_v43 = vpack.c.bf16 %v885_v39, %v883_v38  ;;  %v2359_v38 = vpack.c.bf16 %v914_v34, %v912_v32  ;;  %v911_v39 = vld [vmem:[#allocation2 + $0x8d0] sm:$0xff]  ;;  %v2796_v57 = vsel %vm819_vm10, 0.0, %v2756_v51  ;;  %v1164_v32 = vld [vmem:[#allocation2 + $0xbe8] sm:$0xff] }
 0x3f8   :  { %v2761_v54 = vsel %vm824_vm11, %v823_v52, 1.0  ;;  %2304 = vmatprep.subr.bf16.mxu0 %v2303_v45  ;;  %v887_v45 = vld [vmem:[#allocation2 + $0x810] sm:$0xff]  ;;  %v2339_v52 = vpack.c.bf16 %v894_v48, %v892_v47 }
 0x3f9   :  { %1766 = vmatprep.mubr.msk.f32.mxu0 %vm827_vm12, %v2761_v54  ;;  %v2337_v49 = vpack.c.bf16 %v889_v46, %v887_v45  ;;  %v2789_v45 = vsel %vm827_vm12, %v2761_v54, 0.0  ;;  %v2361_v46 = vpack.c.bf16 %v913_v41, %v911_v39  ;;  %v1133_v48 = vld [vmem:[#allocation2 + $0xaf0] sm:$0xff] }
 0x3fa   :  { %1768 = vmatmul.mubr.msk.f32.gmra.mrb[6].mxu0 %vm2744_vm13, %v2756_v51  ;;  %v839_v54 = vrot.slane %v2789_v45, 4  ;;  %v1298_v45 = vld [vmem:[#allocation2 + $0xd50] sm:$0xff] }
 0x3fb   :  { %2306 = vmatpush1.bf16.msra.mxu0 %v2305_v53  ;;  %1770 = vmatprep.mubr.msk.f32.mxu0 %vm2764_vm15, %v836_v59  ;;  %v292_v63 = vpop.f32.mrb[2].mxu0  ;;  %v891_v53 = vld [vmem:[#allocation2 + $0x830] sm:$0xff] }
 0x3fc   :  { %v2778_v3 = vadd.f32 %v292_v63, %v218_v60  ;;  %v1894_v4 = vpop.f32.mrb[3].mxu0  ;;  %2308 = vmatprep.subr.bf16.mxu0 %v2307_v56  ;;  %v893_v56 = vld [vmem:[#allocation2 + $0x840] sm:$0xff]  ;;  %v840_v51 = vsel %vm834_vm14, %v836_v59, %v839_v54 }
 0x3fd   :  { %v2341_v60 = vpack.c.bf16 %v893_v56, %v891_v53  ;;  %v897_v63 = vld [vmem:[#allocation2 + $0x860] sm:$0xff]  ;;  %v900_v4 = vld [vmem:[#allocation2 + $0x878] sm:$0xff]  ;;  %v1140_v56 = vld [vmem:[#allocation2 + $0xb28] sm:$0xff] }
 0x3fe   :  { %v296_v10 = vmul.f32 %v2778_v3, %v2778_v3  ;;  %v1138_v53 = vld [vmem:[#allocation2 + $0xb18] sm:$0xff] }
 0x3ff   :  { %2310 = vmatpush1.bf16.msra.mxu0 %v2309_v2  ;;  %v1308_v2 = vld [vmem:[#allocation2 + $0xdf0] sm:$0xff] }
 0x400   :  { %2312 = vmatprep.subr.bf16.mxu0 %v2311_v5  ;;  %v298_v12 = vsel %vm297_vm1, %v296_v10, 0.0  ;;  %v902_v5 = vld [vmem:[#allocation2 + $0x888] sm:$0xff]  ;;  %v2428_v7 = vpack.c.bf16 %v1309_v6, %v1308_v2  ;;  %v2345_v10 = vpack.c.bf16 %v897_v63, %v895_v62  ;;  %v1137_v62 = vld [vmem:[#allocation2 + $0xb10] sm:$0xff]  ;;  %v1139_v63 = vld [vmem:[#allocation2 + $0xb20] sm:$0xff]  ;;  %v837_v2 = vrot.slane %v2796_v57, 4 }
 0x401   :  { %299 = vadd.xlane.f32.xlu1 %v298_v12  ;;  %v899_v12 = vld [vmem:[#allocation2 + $0x870] sm:$0xff] }
 0x402   :  { %2429 = vmatpush3.bf16.msra.mxu1 %v2428_v7  ;;  %v1141_v7 = vld [vmem:[#allocation2 + $0xb30] sm:$0xff] }
 0x403   :  { %2314 = vmatpush1.bf16.msra.mxu0 %v2313_v11  ;;  %v2347_v11 = vpack.c.bf16 %v902_v5, %v900_v4  ;;  %2430 = vmatprep.subr.bf16.mxu1 %v2603_v0  ;;  %v1144_v4 = vld [vmem:[#allocation2 + $0xb48] sm:$0xff]  ;;  %v2369_v5 = vpack.c.bf16 %v1139_v63, %v1137_v62  ;;  %v2373_v50 = vpack.c.bf16 %v1143_v8, %v1141_v7  ;;  %v1175_v62 = vld [vmem:[#allocation2 + $0xc40] sm:$0xff]  ;;  %v1178_v63 = vld [vmem:[#allocation2 + $0xc58] sm:$0xff] }
 0x404   :  { %2316 = vmatprep.subr.bf16.mxu0 %v2315_v13  ;;  %v901_v13 = vld [vmem:[#allocation2 + $0x880] sm:$0xff]  ;;  %v1182_v7 = vld [vmem:[#allocation2 + $0xc78] sm:$0xff]  ;;  %v1184_v8 = vld [vmem:[#allocation2 + $0xc88] sm:$0xff] }
 0x405   :  { %v1302_v57 = vld [vmem:[#allocation2 + $0xd90] sm:$0xff] }
 0x406   :  { %2432 = vmatpush3.bf16.msra.mxu1 %v2431_v15 }
 0x407   :  { %2318 = vmatpush1.bf16.msra.mxu0 %v2317_v18  ;;  %v1313_v18 = vld [vmem:[#allocation2 + $0xe40] sm:$0xff]  ;;  %2433 = vmatprep.subr.bf16.mxu1 %v2603_v0 }
 0x408   :  { %2320 = vmatprep.subr.bf16.mxu0 %v2319_v19  ;;  %v2349_v19 = vpack.c.bf16 %v901_v13, %v899_v12  ;;  %v1147_v12 = vld [vmem:[#allocation2 + $0xb60] sm:$0xff]  ;;  %v1150_v13 = vld [vmem:[#allocation2 + $0xb78] sm:$0xff] }
 0x409   :  { %v2379_v16 = vpack.c.bf16 %v1152_v14, %v1150_v13 }
 0x40b   :  { %2322 = vmatpush1.bf16.msra.mxu0 %v2321_v24  ;;  %v2434_v24 = vpack.c.bf16 %v1313_v18, %v1312_v17  ;;  %v1149_v17 = vld [vmem:[#allocation2 + $0xb70] sm:$0xff]  ;;  %v1151_v18 = vld [vmem:[#allocation2 + $0xb80] sm:$0xff] }
 0x40c   :  { %2324 = vmatprep.subr.bf16.mxu0 %v2323_v25  ;;  %v910_v25 = vld [vmem:[#allocation2 + $0x8c8] sm:$0xff]  ;;  %v2381_v21 = vpack.c.bf16 %v1151_v18, %v1149_v17  ;;  %v1190_v17 = vld [vmem:[#allocation2 + $0xcb8] sm:$0xff] }
 0x40d   :  { %v2355_v29 = vpack.c.bf16 %v910_v25, %v908_v23  ;;  %2435 = vmatpush3.bf16.msra.mxu1 %v2434_v24  ;;  %v1153_v23 = vld [vmem:[#allocation2 + $0xb90] sm:$0xff]  ;;  %v1155_v24 = vld [vmem:[#allocation2 + $0xba0] sm:$0xff]  ;;  %v1158_v25 = vld [vmem:[#allocation2 + $0xbb8] sm:$0xff] }
 0x40e   :  { %2436 = vmatprep.subr.bf16.mxu1 %v2603_v0  ;;  %v2385_v27 = vpack.c.bf16 %v1155_v24, %v1153_v23  ;;  %v1192_v18 = vld [vmem:[#allocation2 + $0xcc8] sm:$0xff]  ;;  %v1194_v23 = vld [vmem:[#allocation2 + $0xcd8] sm:$0xff] }
 0x40f   :  { %2326 = vmatpush1.bf16.msra.mxu0 %v2325_v30  ;;  %v907_v30 = vld [vmem:[#allocation2 + $0x8b0] sm:$0xff]  ;;  %v1196_v24 = vld [vmem:[#allocation2 + $0xce8] sm:$0xff] }
 0x410   :  { %2328 = vmatprep.subr.bf16.mxu0 %v2327_v31  ;;  %v909_v31 = vld [vmem:[#allocation2 + $0x8c0] sm:$0xff] }
 0x411   :  { %2438 = vmatpush3.bf16.msra.mxu1 %v2437_v33 }
 0x412   :  { %2439 = vmatprep.subr.bf16.mxu1 %v2603_v0 }
 0x413   :  { %2330 = vmatpush1.bf16.msra.mxu0 %v2329_v36  ;;  %v1317_v36 = vld [vmem:[#allocation2 + $0xe80] sm:$0xff] }
 0x414   :  { %2332 = vmatprep.subr.bf16.mxu0 %v2331_v37  ;;  %v2357_v37 = vpack.c.bf16 %v909_v31, %v907_v30  ;;  %v2440_v42 = vpack.c.bf16 %v1317_v36, %v1316_v35  ;;  %v1159_v30 = vld [vmem:[#allocation2 + $0xbc0] sm:$0xff]  ;;  %v1162_v31 = vld [vmem:[#allocation2 + $0xbd8] sm:$0xff]  ;;  %v1161_v35 = vld [vmem:[#allocation2 + $0xbd0] sm:$0xff] }
 0x415   :  { %v2391_v34 = vpack.c.bf16 %v1164_v32, %v1162_v31  ;;  %v1163_v36 = vld [vmem:[#allocation2 + $0xbe0] sm:$0xff] }
 0x416   :  { %2441 = vmatpush3.bf16.msra.mxu1 %v2440_v42  ;;  %v2393_v39 = vpack.c.bf16 %v1163_v36, %v1161_v35  ;;  %v1165_v42 = vld [vmem:[#allocation2 + $0xbf0] sm:$0xff]  ;;  %v1293_v31 = vld [vmem:[#allocation2 + $0xd00] sm:$0xff] }
 0x417   :  { %2334 = vmatpush1.bf16.msra.mxu0 %v2333_v43  ;;  %v1134_v43 = vld [vmem:[#allocation2 + $0xaf8] sm:$0xff]  ;;  %2442 = vmatprep.subr.bf16.mxu1 %v2603_v0  ;;  %v1296_v36 = vld [vmem:[#allocation2 + $0xd30] sm:$0xff] }
 0x418   :  { %2336 = vmatprep.subr.bf16.mxu0 %v2335_v44  ;;  %v1136_v44 = vld [vmem:[#allocation2 + $0xb08] sm:$0xff] }
 0x419   :  { %v2363_v47 = vpack.c.bf16 %v1136_v44, %v1134_v43  ;;  %v1167_v43 = vld [vmem:[#allocation2 + $0xc00] sm:$0xff]  ;;  %v1170_v44 = vld [vmem:[#allocation2 + $0xc18] sm:$0xff] }
 0x41b   :  { %2338 = vmatpush1.bf16.msra.mxu0 %v2337_v49  ;;  %v1135_v49 = vld [vmem:[#allocation2 + $0xb00] sm:$0xff] }
 0x41c   :  { %2340 = vmatprep.subr.bf16.mxu0 %v2339_v52  ;;  %v820_v52 = vsel %vm819_vm10, 0.0, %v2739_v40  ;;  %v2365_v58 = vpack.c.bf16 %v1135_v49, %v1133_v48  ;;  %v1142_v40 = vld [vmem:[#allocation2 + $0xb38] sm:$0xff]  ;;  %v1169_v49 = vld [vmem:[#allocation2 + $0xc10] sm:$0xff] }
 0x41d   :  { %v2371_v6 = vpack.c.bf16 %v1144_v4, %v1142_v40  ;;  %v1180_v40 = vld [vmem:[#allocation2 + $0xc68] sm:$0xff] }
 0x41f   :  { %2342 = vmatpush1.bf16.msra.mxu0 %v2341_v60  ;;  %v835_v60 = vrot.slane %v820_v52, 4  ;;  %v1171_v52 = vld [vmem:[#allocation2 + $0xc20] sm:$0xff] }
 0x420   :  { %2344 = vmatprep.subr.bf16.mxu0 %v2343_v61  ;;  %v2367_v61 = vpack.c.bf16 %v1140_v56, %v1138_v53  ;;  %v1174_v53 = vld [vmem:[#allocation2 + $0xc38] sm:$0xff]  ;;  %v1176_v56 = vld [vmem:[#allocation2 + $0xc48] sm:$0xff] }
 0x421   :  { %v2810_v9 = vsel %vm834_vm14, %v835_v60, %v837_v2 }
 0x423   :  { %2346 = vmatpush1.bf16.msra.mxu0 %v2345_v10  ;;  %v1148_v10 = vld [vmem:[#allocation2 + $0xb68] sm:$0xff] }
 0x424   :  { %2348 = vmatprep.subr.bf16.mxu0 %v2347_v11  ;;  %v2375_v59 = vpack.c.bf16 %v1148_v10, %v1146_v55  ;;  %v1145_v11 = vld [vmem:[#allocation2 + $0xb50] sm:$0xff]  ;;  %v2411_v10 = vpack.c.bf16 %v1184_v8, %v1182_v7 }
 0x425   :  { %v2377_v15 = vpack.c.bf16 %v1147_v12, %v1145_v11  ;;  %v1186_v11 = vld [vmem:[#allocation2 + $0xc98] sm:$0xff]  ;;  %v1188_v12 = vld [vmem:[#allocation2 + $0xca8] sm:$0xff] }
 0x426   :  { %v2415_v14 = vpack.c.bf16 %v1188_v12, %v1186_v11 }
 0x427   :  { %2350 = vmatpush1.bf16.msra.mxu0 %v2349_v19  ;;  %v1154_v19 = vld [vmem:[#allocation2 + $0xb98] sm:$0xff] }
 0x428   :  { %2352 = vmatprep.subr.bf16.mxu0 %v2351_v20  ;;  %v1156_v20 = vld [vmem:[#allocation2 + $0xba8] sm:$0xff] }
 0x429   :  { %v2383_v22 = vpack.c.bf16 %v1156_v20, %v1154_v19  ;;  %v2419_v20 = vpack.c.bf16 %v1192_v18, %v1190_v17 }
 0x42b   :  { %2354 = vmatpush1.bf16.msra.mxu0 %v2353_v28  ;;  %v2387_v28 = vpack.c.bf16 %v1160_v26, %v1158_v25  ;;  %v2423_v26 = vpack.c.bf16 %v1196_v24, %v1194_v23  ;;  %v1472_v23 = vld [vmem:[#allocation2 + $0xf50] sm:$0xff] }
 0x42c   :  { %2356 = vmatprep.subr.bf16.mxu0 %v2355_v29  ;;  %v1157_v29 = vld [vmem:[#allocation2 + $0xbb0] sm:$0xff] }
 0x42d   :  { %v2389_v33 = vpack.c.bf16 %v1159_v30, %v1157_v29  ;;  %v1292_v30 = vld [vmem:[#allocation2 + $0xcf0] sm:$0xff] }
 0x42e   :  { %v2452_v32 = vpack.c.bf16 %v1293_v31, %v1292_v30  ;;  %v1477_v31 = vld [vmem:[#allocation2 + $0xfa0] sm:$0xff] }
 0x42f   :  { %2358 = vmatpush1.bf16.msra.mxu0 %v2357_v37  ;;  %v1166_v37 = vld [vmem:[#allocation2 + $0xbf8] sm:$0xff] }
 0x430   :  { %2360 = vmatprep.subr.bf16.mxu0 %v2359_v38  ;;  %v1168_v38 = vld [vmem:[#allocation2 + $0xc08] sm:$0xff] }
 0x431   :  { %v2395_v41 = vpack.c.bf16 %v1168_v38, %v1166_v37  ;;  %v1297_v37 = vld [vmem:[#allocation2 + $0xd40] sm:$0xff] }
 0x432   :  { %v2458_v38 = vpack.c.bf16 %v1297_v37, %v1296_v36  ;;  %v1481_v37 = vld [vmem:[#allocation2 + $0xfe0] sm:$0xff] }
 0x433   :  { %2362 = vmatpush1.bf16.msra.mxu0 %v2361_v46  ;;  %v1172_v46 = vld [vmem:[#allocation2 + $0xc28] sm:$0xff] }
 0x434   :  { %2364 = vmatprep.subr.bf16.mxu0 %v2363_v47  ;;  %v2397_v47 = vpack.c.bf16 %v1167_v43, %v1165_v42  ;;  %v2399_v48 = vpack.c.bf16 %v1172_v46, %v1170_v44  ;;  %v1318_v44 = vld [vmem:[#allocation2 + $0xe90] sm:$0xff]  ;;  %v1319_v46 = vld [vmem:[#allocation2 + $0xea0] sm:$0xff] }
 0x436   :  { %1772 = vmatmul.mubr.msk.f32.vlgmr.msra.gmra.mrb[4].mxu0 %vm2764_vm15, %v835_v60  ;;  %v2403_v60 = vpack.c.bf16 %v1176_v56, %v1174_v53  ;;  %v1320_v53 = vld [vmem:[#allocation2 + $0xeb0] sm:$0xff]  ;;  %v1321_v56 = vld [vmem:[#allocation2 + $0xec0] sm:$0xff] }
 0x437   :  { %1126 = vmatprep.mubr.f32.mxu0 %v840_v51  ;;  %2366 = vmatpush1.bf16.msra.mxu0 %v2365_v58  ;;  %v2401_v58 = vpack.c.bf16 %v1171_v52, %v1169_v49  ;;  %v1305_v49 = vld [vmem:[#allocation2 + $0xdc0] sm:$0xff] }
 0x438   :  { %2368 = vmatprep.subr.bf16.mxu0 %v2367_v61  ;;  %v1173_v61 = vld [vmem:[#allocation2 + $0xc30] sm:$0xff] }
 0x439   :  { %v2405_v4 = vpack.c.bf16 %v1175_v62, %v1173_v61  ;;  %v1307_v61 = vld [vmem:[#allocation2 + $0xde0] sm:$0xff] }
 0x43a   :  { %1127 = vmatmul.mubr.f32.gmra.mrb[6].mxu0 %v2810_v9 }
 0x43b   :  { %2370 = vmatpush1.bf16.msra.mxu0 %v2369_v5  ;;  %1261 = vmatprep.mubr.f32.mxu0 %v840_v51  ;;  %v2407_v51 = vpack.c.bf16 %v1180_v40, %v1178_v63  ;;  %v1177_v5 = vld [vmem:[#allocation2 + $0xc50] sm:$0xff]  ;;  %v1323_v40 = vld [vmem:[#allocation2 + $0xee0] sm:$0xff] }
 0x43c   :  { %2372 = vmatprep.subr.bf16.mxu0 %v2371_v6  ;;  %v1179_v6 = vld [vmem:[#allocation2 + $0xc60] sm:$0xff]  ;;  %v1322_v63 = vld [vmem:[#allocation2 + $0xed0] sm:$0xff] }
 0x43d   :  { %v2409_v55 = vpack.c.bf16 %v1179_v6, %v1177_v5 }
 0x43f   :  { %2374 = vmatpush1.bf16.msra.mxu0 %v2373_v50  ;;  %v1181_v50 = vld [vmem:[#allocation2 + $0xc70] sm:$0xff] }
 0x440   :  { %2376 = vmatprep.subr.bf16.mxu0 %v2375_v59  ;;  %v1183_v59 = vld [vmem:[#allocation2 + $0xc80] sm:$0xff] }
 0x441   :  { %v2413_v13 = vpack.c.bf16 %v1183_v59, %v1181_v50 }
 0x443   :  { %2378 = vmatpush1.bf16.msra.mxu0 %v2377_v15  ;;  %v1185_v15 = vld [vmem:[#allocation2 + $0xc90] sm:$0xff] }
 0x444   :  { %2380 = vmatprep.subr.bf16.mxu0 %v2379_v16  ;;  %v1187_v16 = vld [vmem:[#allocation2 + $0xca0] sm:$0xff] }
 0x445   :  { %v2417_v19 = vpack.c.bf16 %v1187_v16, %v1185_v15  ;;  %v1468_v15 = vld [vmem:[#allocation2 + $0xf10] sm:$0xff] }
 0x447   :  { %2382 = vmatpush1.bf16.msra.mxu0 %v2381_v21  ;;  %v1189_v21 = vld [vmem:[#allocation2 + $0xcb0] sm:$0xff] }
 0x448   :  { %2384 = vmatprep.subr.bf16.mxu0 %v2383_v22  ;;  %v1191_v22 = vld [vmem:[#allocation2 + $0xcc0] sm:$0xff] }
 0x449   :  { %v2421_v25 = vpack.c.bf16 %v1191_v22, %v1189_v21  ;;  %v1471_v22 = vld [vmem:[#allocation2 + $0xf40] sm:$0xff] }
 0x44a   :  { %v2482_v24 = vpack.c.bf16 %v1472_v23, %v1471_v22 }
 0x44b   :  { %2386 = vmatpush1.bf16.msra.mxu0 %v2385_v27  ;;  %v1193_v27 = vld [vmem:[#allocation2 + $0xcd0] sm:$0xff] }
 0x44c   :  { %2388 = vmatprep.subr.bf16.mxu0 %v2387_v28  ;;  %v1195_v28 = vld [vmem:[#allocation2 + $0xce0] sm:$0xff] }
 0x44d   :  { %v2425_v29 = vpack.c.bf16 %v1195_v28, %v1193_v27  ;;  %v1475_v28 = vld [vmem:[#allocation2 + $0xf80] sm:$0xff] }
 0x44f   :  { %2390 = vmatpush1.bf16.msra.mxu0 %v2389_v33  ;;  %v1294_v33 = vld [vmem:[#allocation2 + $0xd10] sm:$0xff] }
 0x450   :  { %2392 = vmatprep.subr.bf16.mxu0 %v2391_v34  ;;  %v1295_v34 = vld [vmem:[#allocation2 + $0xd20] sm:$0xff] }
 0x451   :  { %v2455_v35 = vpack.c.bf16 %v1295_v34, %v1294_v33  ;;  %v1479_v34 = vld [vmem:[#allocation2 + $0xfc0] sm:$0xff] }
 0x453   :  { %2394 = vmatpush1.bf16.msra.mxu0 %v2393_v39  ;;  %v1300_v39 = vld [vmem:[#allocation2 + $0xd70] sm:$0xff] }
 0x454   :  { %2396 = vmatprep.subr.bf16.mxu0 %v2395_v41  ;;  %v1301_v41 = vld [vmem:[#allocation2 + $0xd80] sm:$0xff] }
 0x455   :  { %v2464_v42 = vpack.c.bf16 %v1301_v41, %v1300_v39  ;;  %v1556_v39 = vld [vmem:[#allocation2 + $0x1030] sm:$0xff] }
 0x457   :  { %2398 = vmatpush1.bf16.msra.mxu0 %v2397_v47  ;;  %v1304_v47 = vld [vmem:[#allocation2 + $0xdb0] sm:$0xff] }
 0x458   :  { %2400 = vmatprep.subr.bf16.mxu0 %v2399_v48  ;;  %v2443_v48 = vpack.c.bf16 %v1319_v46, %v1318_v44  ;;  %v2470_v52 = vpack.c.bf16 %v1305_v49, %v1304_v47  ;;  %v1560_v46 = vld [vmem:[#allocation2 + $0x1070] sm:$0xff]  ;;  %v1561_v47 = vld [vmem:[#allocation2 + $0x1080] sm:$0xf] }
 0x45a   :  { %2444 = vmatpush3.bf16.msra.mxu1 %v2443_v48  ;;  %v2509_v48 = vpack.c.bf16 %v1561_v47, %v1560_v46 }
 0x45b   :  { %2402 = vmatpush1.bf16.msra.mxu0 %v2401_v58  ;;  %2445 = vmatprep.subr.bf16.mxu1 %v2603_v0  ;;  %v1306_v58 = vld [vmem:[#allocation2 + $0xdd0] sm:$0xff] }
 0x45c   :  { %2404 = vmatprep.subr.bf16.mxu0 %v2403_v60  ;;  %v2446_v60 = vpack.c.bf16 %v1321_v56, %v1320_v53  ;;  %v2473_v62 = vpack.c.bf16 %v1307_v61, %v1306_v58  ;;  %v1464_v56 = vld [vmem:[#allocation2 + $0xef0] ss:$0 sm:$0xff] }
 0x45e   :  { %2447 = vmatpush3.bf16.msra.mxu1 %v2446_v60 }
 0x45f   :  { %2406 = vmatpush1.bf16.msra.mxu0 %v2405_v4  ;;  %2448 = vmatprep.subr.bf16.mxu1 %v2603_v0  ;;  %v2449_v4 = vpack.c.bf16 %v1323_v40, %v1322_v63 }
 0x460   :  { %2408 = vmatprep.subr.bf16.mxu0 %v2407_v51 }
 0x462   :  { %2450 = vmatpush3.bf16.msra.mxu1 %v2449_v4  ;;  %v1483_v4 = vld [vmem:[#allocation2 + $0x1000] ss:$0 sm:$0xff] }
 0x463   :  { %2410 = vmatpush1.bf16.msra.mxu0 %v2409_v55  ;;  %2475 = vmatprep.subr.bf16.mxu1 %v2603_v0 }
 0x464   :  { %2412 = vmatprep.subr.bf16.mxu0 %v2411_v10 }
 0x467   :  { %2414 = vmatpush1.bf16.msra.mxu0 %v2413_v13 }
 0x468   :  { %2416 = vmatprep.subr.bf16.mxu0 %v2415_v14  ;;  %v1467_v14 = vld [vmem:[#allocation2 + $0xf00] sm:$0xff] }
 0x469   :  { %v2476_v17 = vpack.c.bf16 %v1468_v15, %v1467_v14 }
 0x46b   :  { %2418 = vmatpush1.bf16.msra.mxu0 %v2417_v19  ;;  %v1469_v19 = vld [vmem:[#allocation2 + $0xf20] sm:$0xff] }
 0x46c   :  { %2420 = vmatprep.subr.bf16.mxu0 %v2419_v20  ;;  %v1470_v20 = vld [vmem:[#allocation2 + $0xf30] sm:$0xff] }
 0x46d   :  { %v2479_v21 = vpack.c.bf16 %v1470_v20, %v1469_v19 }
 0x46f   :  { %2422 = vmatpush1.bf16.msra.mxu0 %v2421_v25  ;;  %v1473_v25 = vld [vmem:[#allocation2 + $0xf60] sm:$0xff] }
 0x470   :  { %2424 = vmatprep.subr.bf16.mxu0 %v2423_v26  ;;  %v1474_v26 = vld [vmem:[#allocation2 + $0xf70] sm:$0xff] }
 0x471   :  { %v2485_v27 = vpack.c.bf16 %v1474_v26, %v1473_v25 }
 0x473   :  { %2426 = vmatpush1.bf16.msra.mxu0 %v2425_v29  ;;  %v1476_v29 = vld [vmem:[#allocation2 + $0xf90] sm:$0xff] }
 0x474   :  { %2451 = vmatprep.subr.bf16.mxu0 %v2603_v0  ;;  %v2488_v30 = vpack.c.bf16 %v1476_v29, %v1475_v28 }
 0x476   :  { %1262 = vmatmul.mubr.f32.vlgmr.msra.gmra.mrb[4].mxu0 %v2810_v9  ;;  %v1299_v9 = vld [vmem:[#allocation2 + $0xd60] sm:$0xff] }
 0x477   :  { %1773 = vmatprep.mubr.msk.f32.mxu0 %vm834_vm14, %v839_v54  ;;  %2453 = vmatpush3.bf16.msra.mxu0 %v2452_v32  ;;  %v2461_v54 = vpack.c.bf16 %v1299_v9, %v1298_v45  ;;  %v1478_v32 = vld [vmem:[#allocation2 + $0xfb0] sm:$0xff] }
 0x478   :  { %2454 = vmatprep.subr.bf16.mxu0 %v2603_v0  ;;  %v2491_v33 = vpack.c.bf16 %v1478_v32, %v1477_v31  ;;  %v1554_v9 = vld [vmem:[#allocation2 + $0x1010] sm:$0xff] }
 0x47a   :  { %1774 = vmatmul.mubr.msk.f32.gmra.mrb[6].mxu0 %vm834_vm14, %v837_v2  ;;  %v1303_v2 = vld [vmem:[#allocation2 + $0xda0] sm:$0xff] }
 0x47b   :  { %2456 = vmatpush3.bf16.msra.mxu0 %v2455_v35  ;;  %1962 = vmatprep.mubr.msk.f32.mxu0 %vm2604_vm0, %v2605_v1  ;;  %v2467_v43 = vpack.c.bf16 %v1303_v2, %v1302_v57  ;;  %v1480_v35 = vld [vmem:[#allocation2 + $0xfd0] sm:$0xff] }
 0x47c   :  { %2457 = vmatprep.subr.bf16.mxu0 %v2603_v0  ;;  %v2494_v36 = vpack.c.bf16 %v1480_v35, %v1479_v34  ;;  %v1558_v2 = vld [vmem:[#allocation2 + $0x1050] sm:$0xff] }
 0x47f   :  { %2459 = vmatpush3.bf16.msra.mxu0 %v2458_v38  ;;  %v1482_v38 = vld [vmem:[#allocation2 + $0xff0] sm:$0xff] }
 0x480   :  { %2460 = vmatprep.subr.bf16.mxu0 %v2603_v0  ;;  %v2497_v45 = vpack.c.bf16 %v1482_v38, %v1481_v37 }
 0x483   :  { %2462 = vmatpush3.bf16.msra.mxu0 %v2461_v54  ;;  %v1555_v54 = vld [vmem:[#allocation2 + $0x1020] sm:$0xff] }
 0x484   :  { %2463 = vmatprep.subr.bf16.mxu0 %v2603_v0  ;;  %v2500_v41 = vpack.c.bf16 %v1555_v54, %v1554_v9 }
 0x487   :  { %2465 = vmatpush3.bf16.msra.mxu0 %v2464_v42  ;;  %v1557_v42 = vld [vmem:[#allocation2 + $0x1040] sm:$0xff] }
 0x488   :  { %2466 = vmatprep.subr.bf16.mxu0 %v2603_v0  ;;  %v2503_v57 = vpack.c.bf16 %v1557_v42, %v1556_v39 }
 0x48b   :  { %2468 = vmatpush3.bf16.msra.mxu0 %v2467_v43  ;;  %v1559_v43 = vld [vmem:[#allocation2 + $0x1060] sm:$0xff] }
 0x48c   :  { %2469 = vmatprep.subr.bf16.mxu0 %v2603_v0  ;;  %v2506_v44 = vpack.c.bf16 %v1559_v43, %v1558_v2 }
 0x48e   :  { %v300_v63 = vpop.xlane.xlu1 %299 }
 0x48f   :  { %2471 = vmatpush3.bf16.msra.mxu0 %v2470_v52  ;;  %v301_v40 = vmax.f32 %v300_v63, 1e-24 }
 0x490   :  { %2472 = vmatprep.subr.bf16.mxu0 %v2603_v0 }
 0x491   :  { %2548 = vrsqrt.f32 %v301_v40 }
 0x493   :  { %2474 = vmatpush3.bf16.msra.mxu0 %v2473_v62 }
 0x494   :  { %2499 = vmatprep.subr.bf16.mxu0 %v2603_v0 }
 0x549   :  { %v1263_v51 = vpop.f32.mrb[4].mxu0 }
 0x54a   :  { %v1278_v5 = vmax.f32 %v1263_v51, 0.0  ;;  %v1265_v6 = vpop.f32.mrb[5].mxu0 }
 0x54b   :  { %v1279_v7 = vmax.f32 %v1265_v6, 0.0 }
 0x54d   :  { %v1282_v8 = vmax.f32 %v1278_v5, %v1279_v7  ;;  %v1269_v55 = vpop.f32.mrb[6].mxu0 }
 0x54e   :  { %v1280_v10 = vmax.f32 %v1269_v55, 0.0  ;;  %v1271_v50 = vpop.f32.mrb[7].mxu0 }
 0x54f   :  { %v1285_v59 = vrot.slane %v1282_v8, 4  ;;  %v1281_v11 = vmax.f32 %v1271_v50, 0.0 }
 0x551   :  { %v1287_v12 = vmax.f32 %v1282_v8, %v1285_v59  ;;  %v1283_v13 = vmax.f32 %v1280_v10, %v1281_v11  ;;  %v1562_v8 = vld [vmem:[#allocation2 + $0x1090] ss:$0 sm:$0xff] }
 0x553   :  { %v1289_v16 = vrot.slane %v1283_v13, 4  ;;  %1963 = vmatmul.mubr.f32.vlgmr.msra.gmra.mrb[8].mxu0 %v1287_v12 }
 0x554   :  { %2016 = vmatprep.mubr.msk.f32.mxu0 %vm2604_vm0, %v2605_v1  ;;  %2501 = vmatpush3.bf16.msra.mxu0 %v2500_v41 }
 0x555   :  { %v1291_v18 = vmax.f32 %v1283_v13, %v1289_v16  ;;  %2502 = vmatprep.subr.bf16.mxu0 %v2603_v0 }
 0x557   :  { %1928 = vmatmul.mubr.f32.vlgmr.msra.gmra.mrb[10].mxu1 %v1291_v18 }
 0x558   :  { %2477 = vmatpush3.bf16.msra.mxu1 %v2476_v17  ;;  %1997 = vmatprep.mubr.msk.f32.mxu1 %vm2604_vm0, %v2605_v1 }
 0x559   :  { %2478 = vmatprep.subr.bf16.mxu1 %v2603_v0  ;;  %2504 = vmatpush3.bf16.msra.mxu0 %v2503_v57 }
 0x55a   :  { %2505 = vmatprep.subr.bf16.mxu0 %v2603_v0 }
 0x55c   :  { %2480 = vmatpush3.bf16.msra.mxu1 %v2479_v21 }
 0x55d   :  { %2481 = vmatprep.subr.bf16.mxu1 %v2603_v0  ;;  %2507 = vmatpush3.bf16.msra.mxu0 %v2506_v44 }
 0x55e   :  { %2508 = vmatprep.subr.bf16.mxu0 %v2603_v0 }
 0x560   :  { %2483 = vmatpush3.bf16.msra.mxu1 %v2482_v24 }
 0x561   :  { %2484 = vmatprep.subr.bf16.mxu1 %v2603_v0  ;;  %2511 = vmatpush3.bf16.msk.msra.mxu0 %vm2510_vm2, %v2509_v48 }
 0x562   :  { %2019 = vmatprep.subr.mxu0 %v2605_v1 }
 0x564   :  { %2486 = vmatpush3.bf16.msra.mxu1 %v2485_v27 }
 0x565   :  { %2487 = vmatprep.subr.bf16.mxu1 %v2603_v0 }
 0x568   :  { %2489 = vmatpush3.bf16.msra.mxu1 %v2488_v30 }
 0x569   :  { %2490 = vmatprep.subr.bf16.mxu1 %v2603_v0 }
 0x56c   :  { %2492 = vmatpush3.bf16.msra.mxu1 %v2491_v33 }
 0x56d   :  { %2493 = vmatprep.subr.bf16.mxu1 %v2603_v0 }
 0x570   :  { %2495 = vmatpush3.bf16.msra.mxu1 %v2494_v36 }
 0x571   :  { %2496 = vmatprep.subr.bf16.mxu1 %v2603_v0  ;;  %v2549_v0 = vpop.eup %2548 }
 0x572   :  { %v303_v7 = vmul.f32 %v2549_v0, %v2778_v3 }
 0x574   :  { %2498 = vmatpush3.bf16.msra.mxu1 %v2497_v45 }
 0x626   :  { %v1460_v49 = vpop.f32.mrb[8].mxu0 }
 0x627   :  { %v1964_v52 = vpop.f32.mrb[9].mxu0 }
 0x62a   :  { %v1390_v53 = vpop.f32.mrb[10].mxu1 }
 0x62b   :  { %v1461_v58 = vadd.f32 %v1460_v49, %v1390_v53  ;;  %v1929_v60 = vpop.f32.mrb[11].mxu1 }
 0x62d   :  { %v1465_v61 = vadd.f32 %v1464_v56, %v1461_v58 }
 0x62f   :  { %v1466_v62 = vmax.f32 %v1465_v61, 0.0 }
 0x631   :  { %1998 = vmatmul.mubr.f32.vlgmr.msra.gmra.mrb[12].mxu1 %v1466_v62 }
 0x704   :  { %v1550_v51 = vpop.f32.mrb[12].mxu1 }
 0x705   :  { %v1551_v5 = vadd.f32 %v1550_v51, %v1483_v4  ;;  %v1999_v6 = vpop.f32.mrb[13].mxu1 }
 0x707   :  { %2017 = vmatmul.mubr.msk.f32.vlgmr.msra.gmra.mrb[10].mxu0 %vm1563_vm3, %v1551_v5 }
 0x708   :  { %2020 = vmatpush3.xpose.msk.msra.mxu0 %vm1647_vm4, %v303_v7  ;;  %2021 = vmatprep.mubr.msk.f32.mxu0 %vm2604_vm0, %v2605_v1 }
 0x7da   :  { %v1636_v55 = vpop.f32.mrb[10].mxu0 }
 0x7db   :  { %v1637_v10 = vadd.f32 %v1636_v55, %v1562_v8  ;;  %v2018_v50 = vpop.f32.mrb[11].mxu0 }
 0x7dd   :  { %v1640_v59 = vmul.f32 %v1637_v10, %v1637_v10 }
 0x7df   :  { %v1641_v11 = vsel %vm297_vm1, %v1640_v59, 0.0 }
 0x7e0   :  { %1642 = vadd.xlane.f32.xlu0 %v1641_v11 }
 0x86d   :  { %v1643_v12 = vpop.xlane.xlu0 %1642 }
 0x86e   :  { %v1644_v13 = vmax.f32 %v1643_v12, 1e-24 }
 0x870   :  { %2550 = vrsqrt.f32 %v1644_v13 }
 0x87a   :  { %v2551_v14 = vpop.eup %2550 }
 0x87b   :  { %v1646_v15 = vmul.f32 %v2551_v14, %v1637_v10 }
 0x87d   :  { %2022 = vmatmul.mubr.msk.f32.vlgmr.msra.gmra.mrb[12].mxu0 %vm1647_vm4, %v1646_v15 }
 0x950   :  { %v1720_v3 = vpop.f32.mrb[12].mxu0 }
 0x951   :  { %v1724_v1 = vmul.f32 14.285714, %v1720_v3  ;;  %v2023_v16 = vpop.f32.mrb[13].mxu0 }
 0x953   :  { %1726 = vst.msk [vmem:[#allocation5] sm:$0xf] %vm1725_vm5, %v1724_v1 }
 0x954   :  { %2585 = shalt.err (!%p2582_p12)
}
 0x955   :  { %s2586_s2 = scalar_lea.hbm %s2872_s3, 64 }
 0x956   :  { %p2587_p13 = scmp.ne.s32.totalorder %s2872_s3, %s2586_s2  ;;  %p2590_p0 = scmp.lt.u32.totalorder %s2586_s2, %s2872_s3 }
 0x958   :  { %p2592_p1 = pnand %p2590_p0, %p2587_p13 }
 0x95a   :  { %2595 = shalt.err (!%p2592_p1)
}
 0x95b   :  { %1736 = dma.vmem_to_hbm [thread:$0]  %s1734_s22, 64, %s2872_s3, [#allocation4]  }
 0x95c   :  { %2598 = dma.done.wait [#allocation4], 64  }
 0x95d   :  { %2599 = vsyncadd [#allocation4], 4294967232 }
 0x95e   :  { %1740 = vsyncpa [#allocation3], 1 }
 0x95f   :  { %1741 = vsyncpa [#allocation4], 1 }

</bundles_post_ra>
